<compile_context>
chip_gen: v6e
topology: v6e:2x2x1
jax: 0.10.0
libtpu: 0.0.40
codegen_flags: <defaults>
</compile_context>

<pallas_src>
import functools

import jax
import jax.numpy as jnp
import numpy as np
from jax.experimental import pallas as pl
from jax.experimental.pallas import tpu as pltpu


VMEM_LIMIT = 32 * 1024 * 1024   # fits v5e/v6e/v7x; real usage is < 4 MiB
FC_K = 32 * 11 * 11             # 3872
FC_K_PAD = 4096                 # pad so the K grid tiles evenly
FC_TK = 1024                    # fc1 K-tile (bf16 tile = 1 MiB, 2x buffered)


# ---------------------------------------------------------------------------
# Pallas kernel: conv-as-GEMM,  out(OC, N) = relu(W(OC,K) @ P(K,N) + b(OC,1))
# Column axis N = B*OH*OW is lane-dense and tiled over a "parallel" grid.
# ---------------------------------------------------------------------------
def _conv_gemm_kernel(w_ref, p_ref, b_ref, o_ref):
    acc = jnp.dot(w_ref[...], p_ref[...], preferred_element_type=jnp.float32)
    acc = jnp.maximum(acc + b_ref[...], 0.0)       # bias (OC,1) -> bcast cols
    o_ref[...] = acc.astype(o_ref.dtype)


def conv_gemm_relu(w_mat, patches, bias):
    """w_mat: (OC, K) bf16, patches: (K, N) bf16, bias: (OC, 1) f32 -> (OC, N) bf16."""
    OC, K = w_mat.shape
    K2, N = patches.shape
    assert K == K2, (K, K2)
    # lane-dense column tile; fall back to one full block if N isn't 128-aligned
    if N % 384 == 0:
        tn = 384
    elif N % 128 == 0:
        tn = 128
    else:
        tn = N
    grid_n = N // tn
    return pl.pallas_call(
        _conv_gemm_kernel,
        out_shape=jax.ShapeDtypeStruct((OC, N), jnp.bfloat16),
        grid=(grid_n,),
        in_specs=[
            pl.BlockSpec((OC, K), lambda j: (0, 0)),
            pl.BlockSpec((K, tn), lambda j: (0, j)),
            pl.BlockSpec((OC, 1), lambda j: (0, 0)),
        ],
        out_specs=pl.BlockSpec((OC, tn), lambda j: (0, j)),
        compiler_params=pltpu.CompilerParams(
            dimension_semantics=("parallel",),
            vmem_limit_bytes=VMEM_LIMIT,
        ),
    )(w_mat, patches, bias)


# ---------------------------------------------------------------------------
# Pallas kernel: fused FC stack  fc3(relu(fc2(relu(fc1(x)))))
# Grid over fc1's K (reduction, "arbitrary"); wf1 tiles stream through VMEM
# while wf2/wf3/biases stay resident; fc1 accumulates into f32 scratch.
# ---------------------------------------------------------------------------
def _fused_fc_kernel(x_ref, w1_ref, b1_ref, w2_ref, b2_ref, w3_ref, b3_ref,
                     o_ref, acc_ref):
    k = pl.program_id(0)

    @pl.when(k == 0)
    def _():
        acc_ref[...] = jnp.zeros_like(acc_ref)

    acc_ref[...] += jnp.dot(x_ref[...], w1_ref[...],
                            preferred_element_type=jnp.float32)

    @pl.when(k == pl.num_programs(0) - 1)
    def _():
        h1 = jnp.maximum(acc_ref[...] + b1_ref[...], 0.0)
        h2 = jnp.dot(h1.astype(w2_ref.dtype), w2_ref[...],
                     preferred_element_type=jnp.float32) + b2_ref[...]
        h2 = jnp.maximum(h2, 0.0)
        out = jnp.dot(h2.astype(w3_ref.dtype), w3_ref[...],
                      preferred_element_type=jnp.float32) + b3_ref[...]
        o_ref[...] = out.astype(o_ref.dtype)


def fused_fc(x, w1, b1, w2, b2, w3, b3):
    """x: (B, K_pad) bf16, w*: (K,N) bf16, b*: (1,N) f32 -> (B, N3) f32."""
    B, K = x.shape
    assert K % FC_TK == 0, (K, FC_TK)
    KT = K // FC_TK
    N1, N2, N3 = w1.shape[1], w2.shape[1], w3.shape[1]
    return pl.pallas_call(
        _fused_fc_kernel,
        out_shape=jax.ShapeDtypeStruct((B, N3), jnp.float32),
        grid=(KT,),
        in_specs=[
            pl.BlockSpec((B, FC_TK), lambda k: (0, k)),
            pl.BlockSpec((FC_TK, N1), lambda k: (k, 0)),
            pl.BlockSpec((1, N1), lambda k: (0, 0)),
            pl.BlockSpec((N1, N2), lambda k: (0, 0)),
            pl.BlockSpec((1, N2), lambda k: (0, 0)),
            pl.BlockSpec((N2, N3), lambda k: (0, 0)),
            pl.BlockSpec((1, N3), lambda k: (0, 0)),
        ],
        out_specs=pl.BlockSpec((B, N3), lambda k: (0, 0)),
        scratch_shapes=[pltpu.VMEM((B, N1), jnp.float32)],
        compiler_params=pltpu.CompilerParams(
            dimension_semantics=("arbitrary",),
            vmem_limit_bytes=VMEM_LIMIT,
        ),
    )(x, w1, b1, w2, b2, w3, b3)


# ---------------------------------------------------------------------------
# im2col glue (plain JAX, fused by jit).  Channel-major layout:
#   x (C, B, H, W) -> patches^T (C*KH*KW, B*OH*OW), row order (C, KH, KW)
#   matching PyTorch's weight.reshape(OC, -1).
# TODO(synk): move im2col into the Pallas kernel (sum over (KH,KW) of strided
#             matmuls) to avoid materializing the patch matrix in XLA.
# ---------------------------------------------------------------------------
def im2col_cm(x, kh, kw, sh, sw):
    C, B, H, W = x.shape
    oh = (H - kh) // sh + 1
    ow = (W - kw) // sw + 1
    slabs = []
    for i in range(kh):
        for j in range(kw):
            slabs.append(x[:, :, i : i + sh * oh : sh, j : j + sw * ow : sw])
    p = jnp.stack(slabs, axis=0).reshape(kh, kw, C, B, oh, ow)
    p = jnp.transpose(p, (2, 0, 1, 3, 4, 5))       # (C, KH, KW, B, OH, OW)
    return p.reshape(C * kh * kw, B * oh * ow), oh, ow


# ---------------------------------------------------------------------------
# Parameter init (deterministic, PyTorch-style uniform bounds) + one-time
# packing into kernel-friendly layouts/dtypes (no runtime transposes).
# ---------------------------------------------------------------------------
def _uniform(key, shape, fan_in):
    bound = 1.0 / np.sqrt(fan_in)
    return jax.random.uniform(key, shape, jnp.float32, -bound, bound)


def init_dqn_params(key, output_size):
    ks = jax.random.split(key, 10)
    p = {}
    p["w1"] = _uniform(ks[0], (16, 4, 8, 8), 4 * 8 * 8)
    p["b1"] = _uniform(ks[1], (16,), 4 * 8 * 8)
    p["w2"] = _uniform(ks[2], (32, 16, 4, 4), 16 * 4 * 4)
    p["b2"] = _uniform(ks[3], (32,), 16 * 4 * 4)
    p["wf1"] = _uniform(ks[4], (512, FC_K), FC_K)
    p["bf1"] = _uniform(ks[5], (512,), FC_K)
    p["wf2"] = _uniform(ks[6], (256, 512), 512)
    p["bf2"] = _uniform(ks[7], (256,), 512)
    p["wf3"] = _uniform(ks[8], (output_size, 256), 256)
    p["bf3"] = _uniform(ks[9], (output_size,), 256)
    return p


def pack_params(p, output_size):
    q = {}
    # conv weights: natural PyTorch (OC, C*KH*KW) order, bf16
    q["w1"] = p["w1"].reshape(16, 4 * 8 * 8).astype(jnp.bfloat16)
    q["b1"] = p["b1"].reshape(16, 1).astype(jnp.float32)
    q["w2"] = p["w2"].reshape(32, 16 * 4 * 4).astype(jnp.bfloat16)
    q["b2"] = p["b2"].reshape(32, 1).astype(jnp.float32)
    # fc weights: pre-transposed to (K, N), bf16; wf1 zero-padded on K
    wf1_t = p["wf1"].T.astype(jnp.bfloat16)                 # (3872, 512)
    q["wf1"] = jnp.pad(wf1_t, ((0, FC_K_PAD - FC_K), (0, 0)))
    q["bf1"] = p["bf1"].reshape(1, 512).astype(jnp.float32)
    q["wf2"] = p["wf2"].T.astype(jnp.bfloat16)              # (512, 256)
    q["bf2"] = p["bf2"].reshape(1, 256).astype(jnp.float32)
    q["wf3"] = p["wf3"].T.astype(jnp.bfloat16)              # (256, out)
    q["bf3"] = p["bf3"].reshape(1, output_size).astype(jnp.float32)
    return q


# ---------------------------------------------------------------------------
# Forward pass (mirrors DQN.forward), fully jitted.
# ---------------------------------------------------------------------------
def dqn_forward(params, x):
    # x: (B, 4, 100, 100) NCHW float32
    B = x.shape[0]
    x = jnp.transpose(x, (1, 0, 2, 3)).astype(jnp.bfloat16)     # (C, B, H, W)

    # conv1 (4 -> 16, 8x8, stride 4) + ReLU
    p1, oh1, ow1 = im2col_cm(x, 8, 8, 4, 4)                     # (256, B*24*24)
    y1 = conv_gemm_relu(params["w1"], p1, params["b1"])         # (16, B*24*24)
    y1 = y1.reshape(16, B, oh1, ow1)

    # conv2 (16 -> 32, 4x4, stride 2) + ReLU
    p2, oh2, ow2 = im2col_cm(y1, 4, 4, 2, 2)                    # (256, B*11*11)
    y2 = conv_gemm_relu(params["w2"], p2, params["b2"])         # (32, B*11*11)

    # flatten in PyTorch NCHW .view(B, -1) order: (B, C*H*W)
    y2 = y2.reshape(32, B, oh2, ow2).transpose(1, 0, 2, 3).reshape(B, -1)
    y2 = jnp.pad(y2, ((0, 0), (0, FC_K_PAD - y2.shape[1])))     # (B, 4096) bf16

    # fused fc1 -> relu -> fc2 -> relu -> fc3
    return fused_fc(y2, params["wf1"], params["bf1"],
                    params["wf2"], params["bf2"],
                    params["wf3"], params["bf3"])


dqn_forward_jit = jax.jit(dqn_forward)


if __name__ == "__main__":
    output_size = 6
    key = jax.random.PRNGKey(0)
    k_x, k_p = jax.random.split(key)

    # Input must be 100x100 so the conv stack yields 32*11*11 = fc1's fan-in.
    x = jax.random.normal(k_x, (2, 4, 100, 100), dtype=jnp.float32)
    params = pack_params(init_dqn_params(k_p, output_size), output_size)

    out = dqn_forward_jit(params, x)
    jax.block_until_ready(out)
    assert out.shape == (2, output_size), out.shape
    assert out.dtype == jnp.float32
    assert bool(jnp.all(jnp.isfinite(out)))
    print("KERNEL_OK")
</pallas_src>

<mosaic_0001>
module attributes {stable_mosaic.version = 11 : i64} {
  func.func @_conv_gemm_kernel(%arg0: i32, %arg1: memref<16x256xbf16, #tpu.memory_space<vmem>>, %arg2: memref<256x384xbf16, #tpu.memory_space<vmem>>, %arg3: memref<16x1xf32, #tpu.memory_space<vmem>>, %arg4: memref<16x384xbf16, #tpu.memory_space<vmem>>) attributes {dimension_semantics = [#tpu.dimension_semantics<parallel>], iteration_bounds = array<i64: 3>, scalar_prefetch = 0 : i64, scratch_operands = 0 : i64, tpu.core_type = #tpu.core_type<tc>, window_params = [{pipeline_mode = #tpu.pipeline_mode<synchronous>, transform_indices = @transform_0, window_bounds = array<i64: 16, 256>}, {transform_indices = @transform_1, window_bounds = array<i64: 256, 384>}, {pipeline_mode = #tpu.pipeline_mode<synchronous>, transform_indices = @transform_2, window_bounds = array<i64: 16, 1>}, {transform_indices = @transform_3, window_bounds = array<i64: 16, 384>}]} {
    %c0 = arith.constant 0 : index
    %c0_0 = arith.constant 0 : index
    %0 = vector.load %arg1[%c0, %c0_0] : memref<16x256xbf16, #tpu.memory_space<vmem>>, vector<16x256xbf16>
    %c0_1 = arith.constant 0 : index
    %c0_2 = arith.constant 0 : index
    %1 = vector.load %arg2[%c0_1, %c0_2] : memref<256x384xbf16, #tpu.memory_space<vmem>>, vector<256x384xbf16>
    %cst = arith.constant dense<0.000000e+00> : vector<16x384xf32>
    %2 = tpu.matmul %0, %1, %cst {dimension_numbers = #tpu.dot_dimension_numbers<[1], [0], [0], [1], [0, 0, 1, 1], [], []>} : vector<16x256xbf16>, vector<256x384xbf16>, vector<16x384xf32> -> vector<16x384xf32>
    %c0_3 = arith.constant 0 : index
    %c0_4 = arith.constant 0 : index
    %3 = vector.load %arg3[%c0_3, %c0_4] : memref<16x1xf32, #tpu.memory_space<vmem>>, vector<16x1xf32>
    %4 = vector.broadcast %3 : vector<16x1xf32> to vector<16x384xf32>
    %5 = arith.addf %2, %4 : vector<16x384xf32>
    %cst_5 = arith.constant 0.000000e+00 : f32
    %6 = vector.broadcast %cst_5 : f32 to vector<16x384xf32>
    %7 = arith.maximumf %5, %6 : vector<16x384xf32>
    %8 = arith.truncf %7 : vector<16x384xf32> to vector<16x384xbf16>
    %c0_6 = arith.constant 0 : index
    %c0_7 = arith.constant 0 : index
    %9 = vector.load %arg4[%c0_6, %c0_7] : memref<16x384xbf16, #tpu.memory_space<vmem>>, vector<16x384xbf16>
    tpu.vector_store %arg4[%c0_6, %c0_7], %8 {strides = array<i32>} : memref<16x384xbf16, #tpu.memory_space<vmem>>, vector<16x384xbf16>,
    return
  }
  func.func @transform_0(%arg0: i32) -> (i32, i32) {
    %c0_i32 = arith.constant 0 : i32
    %c0_i32_0 = arith.constant 0 : i32
    %c0_i32_1 = arith.constant 0 : i32
    return %c0_i32, %c0_i32_0 : i32, i32
  }
  func.func @transform_1(%arg0: i32) -> (i32, i32) {
    %c0_i32 = arith.constant 0 : i32
    %c0_i32_0 = arith.constant 0 : i32
    return %c0_i32, %arg0 : i32, i32
  }
  func.func @transform_2(%arg0: i32) -> (i32, i32) {
    %c0_i32 = arith.constant 0 : i32
    %c0_i32_0 = arith.constant 0 : i32
    %c0_i32_1 = arith.constant 0 : i32
    return %c0_i32, %c0_i32_0 : i32, i32
  }
  func.func @transform_3(%arg0: i32) -> (i32, i32) {
    %c0_i32 = arith.constant 0 : i32
    %c0_i32_0 = arith.constant 0 : i32
    return %c0_i32, %arg0 : i32, i32
  }
}

module attributes {stable_mosaic.version = 11 : i64} {
  func.func @_conv_gemm_kernel(%arg0: i32, %arg1: memref<32x256xbf16, #tpu.memory_space<vmem>>, %arg2: memref<256x242xbf16, #tpu.memory_space<vmem>>, %arg3: memref<32x1xf32, #tpu.memory_space<vmem>>, %arg4: memref<32x242xbf16, #tpu.memory_space<vmem>>) attributes {dimension_semantics = [#tpu.dimension_semantics<parallel>], iteration_bounds = array<i64: 1>, scalar_prefetch = 0 : i64, scratch_operands = 0 : i64, tpu.core_type = #tpu.core_type<tc>, window_params = [{pipeline_mode = #tpu.pipeline_mode<synchronous>, transform_indices = @transform_0, window_bounds = array<i64: 32, 256>}, {transform_indices = @transform_1, window_bounds = array<i64: 256, 242>}, {pipeline_mode = #tpu.pipeline_mode<synchronous>, transform_indices = @transform_2, window_bounds = array<i64: 32, 1>}, {transform_indices = @transform_3, window_bounds = array<i64: 32, 242>}]} {
    %c0 = arith.constant 0 : index
    %c0_0 = arith.constant 0 : index
    %0 = vector.load %arg1[%c0, %c0_0] : memref<32x256xbf16, #tpu.memory_space<vmem>>, vector<32x256xbf16>
    %c0_1 = arith.constant 0 : index
    %c0_2 = arith.constant 0 : index
    %1 = vector.load %arg2[%c0_1, %c0_2] : memref<256x242xbf16, #tpu.memory_space<vmem>>, vector<256x242xbf16>
    %cst = arith.constant dense<0.000000e+00> : vector<32x242xf32>
    %2 = tpu.matmul %0, %1, %cst {dimension_numbers = #tpu.dot_dimension_numbers<[1], [0], [0], [1], [0, 0, 1, 1], [], []>} : vector<32x256xbf16>, vector<256x242xbf16>, vector<32x242xf32> -> vector<32x242xf32>
    %c0_3 = arith.constant 0 : index
    %c0_4 = arith.constant 0 : index
    %3 = vector.load %arg3[%c0_3, %c0_4] : memref<32x1xf32, #tpu.memory_space<vmem>>, vector<32x1xf32>
    %4 = vector.broadcast %3 : vector<32x1xf32> to vector<32x242xf32>
    %5 = arith.addf %2, %4 : vector<32x242xf32>
    %cst_5 = arith.constant 0.000000e+00 : f32
    %6 = vector.broadcast %cst_5 : f32 to vector<32x242xf32>
    %7 = arith.maximumf %5, %6 : vector<32x242xf32>
    %8 = arith.truncf %7 : vector<32x242xf32> to vector<32x242xbf16>
    %c0_6 = arith.constant 0 : index
    %c0_7 = arith.constant 0 : index
    %9 = vector.load %arg4[%c0_6, %c0_7] : memref<32x242xbf16, #tpu.memory_space<vmem>>, vector<32x242xbf16>
    tpu.vector_store %arg4[%c0_6, %c0_7], %8 {strides = array<i32>} : memref<32x242xbf16, #tpu.memory_space<vmem>>, vector<32x242xbf16>,
    return
  }
  func.func @transform_0(%arg0: i32) -> (i32, i32) {
    %c0_i32 = arith.constant 0 : i32
    %c0_i32_0 = arith.constant 0 : i32
    %c0_i32_1 = arith.constant 0 : i32
    return %c0_i32, %c0_i32_0 : i32, i32
  }
  func.func @transform_1(%arg0: i32) -> (i32, i32) {
    %c0_i32 = arith.constant 0 : i32
    %c0_i32_0 = arith.constant 0 : i32
    return %c0_i32, %arg0 : i32, i32
  }
  func.func @transform_2(%arg0: i32) -> (i32, i32) {
    %c0_i32 = arith.constant 0 : i32
    %c0_i32_0 = arith.constant 0 : i32
    %c0_i32_1 = arith.constant 0 : i32
    return %c0_i32, %c0_i32_0 : i32, i32
  }
  func.func @transform_3(%arg0: i32) -> (i32, i32) {
    %c0_i32 = arith.constant 0 : i32
    %c0_i32_0 = arith.constant 0 : i32
    return %c0_i32, %arg0 : i32, i32
  }
}

module attributes {stable_mosaic.version = 11 : i64} {
  func.func @_fused_fc_kernel(%arg0: i32, %arg1: memref<2x1024xbf16, #tpu.memory_space<vmem>>, %arg2: memref<1024x512xbf16, #tpu.memory_space<vmem>>, %arg3: memref<1x512xf32, #tpu.memory_space<vmem>>, %arg4: memref<512x256xbf16, #tpu.memory_space<vmem>>, %arg5: memref<1x256xf32, #tpu.memory_space<vmem>>, %arg6: memref<256x6xbf16, #tpu.memory_space<vmem>>, %arg7: memref<1x6xf32, #tpu.memory_space<vmem>>, %arg8: memref<2x6xf32, #tpu.memory_space<vmem>>, %arg9: memref<2x512xf32, #tpu.memory_space<vmem>>) attributes {dimension_semantics = [#tpu.dimension_semantics<arbitrary>], iteration_bounds = array<i64: 4>, scalar_prefetch = 0 : i64, scratch_operands = 1 : i64, tpu.core_type = #tpu.core_type<tc>, window_params = [{transform_indices = @transform_0, window_bounds = array<i64: 2, 1024>}, {transform_indices = @transform_1, window_bounds = array<i64: 1024, 512>}, {pipeline_mode = #tpu.pipeline_mode<synchronous>, transform_indices = @transform_2, window_bounds = array<i64: 1, 512>}, {pipeline_mode = #tpu.pipeline_mode<synchronous>, transform_indices = @transform_3, window_bounds = array<i64: 512, 256>}, {pipeline_mode = #tpu.pipeline_mode<synchronous>, transform_indices = @transform_4, window_bounds = array<i64: 1, 256>}, {pipeline_mode = #tpu.pipeline_mode<synchronous>, transform_indices = @transform_5, window_bounds = array<i64: 256, 6>}, {pipeline_mode = #tpu.pipeline_mode<synchronous>, transform_indices = @transform_6, window_bounds = array<i64: 1, 6>}, {pipeline_mode = #tpu.pipeline_mode<synchronous>, transform_indices = @transform_7, window_bounds = array<i64: 2, 6>}]} {
    %c0_i32 = arith.constant 0 : i32
    %0 = arith.cmpi eq, %arg0, %c0_i32 : i32
    %1 = arith.extui %0 : i1 to i32
    %c0_i32_0 = arith.constant 0 : i32
    %2 = arith.cmpi ne, %1, %c0_i32_0 : i32
    scf.if %2 {
      %cst_9 = arith.constant 0.000000e+00 : f32
      %12 = vector.broadcast %cst_9 : f32 to vector<2x512xf32>
      %c0_10 = arith.constant 0 : index
      %c0_11 = arith.constant 0 : index
      %13 = vector.load %arg9[%c0_10, %c0_11] : memref<2x512xf32, #tpu.memory_space<vmem>>, vector<2x512xf32>
      tpu.vector_store %arg9[%c0_10, %c0_11], %12 {strides = array<i32>} : memref<2x512xf32, #tpu.memory_space<vmem>>, vector<2x512xf32>,
    } else {
    }
    %c0 = arith.constant 0 : index
    %c0_1 = arith.constant 0 : index
    %3 = vector.load %arg9[%c0, %c0_1] : memref<2x512xf32, #tpu.memory_space<vmem>>, vector<2x512xf32>
    %c0_2 = arith.constant 0 : index
    %c0_3 = arith.constant 0 : index
    %4 = vector.load %arg1[%c0_2, %c0_3] : memref<2x1024xbf16, #tpu.memory_space<vmem>>, vector<2x1024xbf16>
    %c0_4 = arith.constant 0 : index
    %c0_5 = arith.constant 0 : index
    %5 = vector.load %arg2[%c0_4, %c0_5] : memref<1024x512xbf16, #tpu.memory_space<vmem>>, vector<1024x512xbf16>
    %cst = arith.constant dense<0.000000e+00> : vector<2x512xf32>
    %6 = tpu.matmul %4, %5, %cst {dimension_numbers = #tpu.dot_dimension_numbers<[1], [0], [0], [1], [0, 0, 1, 1], [], []>} : vector<2x1024xbf16>, vector<1024x512xbf16>, vector<2x512xf32> -> vector<2x512xf32>
    %7 = arith.addf %3, %6 : vector<2x512xf32>
    %c0_6 = arith.constant 0 : index
    %c0_7 = arith.constant 0 : index
    %8 = vector.load %arg9[%c0_6, %c0_7] : memref<2x512xf32, #tpu.memory_space<vmem>>, vector<2x512xf32>
    tpu.vector_store %arg9[%c0_6, %c0_7], %7 {strides = array<i32>} : memref<2x512xf32, #tpu.memory_space<vmem>>, vector<2x512xf32>,
    %c3_i32 = arith.constant 3 : i32
    %9 = arith.cmpi eq, %arg0, %c3_i32 : i32
    %10 = arith.extui %9 : i1 to i32
    %c0_i32_8 = arith.constant 0 : i32
    %11 = arith.cmpi ne, %10, %c0_i32_8 : i32
    scf.if %11 {
      %c0_9 = arith.constant 0 : index
      %c0_10 = arith.constant 0 : index
      %12 = vector.load %arg9[%c0_9, %c0_10] : memref<2x512xf32, #tpu.memory_space<vmem>>, vector<2x512xf32>
      %c0_11 = arith.constant 0 : index
      %c0_12 = arith.constant 0 : index
      %13 = vector.load %arg3[%c0_11, %c0_12] : memref<1x512xf32, #tpu.memory_space<vmem>>, vector<1x512xf32>
      %14 = vector.broadcast %13 : vector<1x512xf32> to vector<2x512xf32>
      %15 = arith.addf %12, %14 : vector<2x512xf32>
      %cst_13 = arith.constant 0.000000e+00 : f32
      %16 = vector.broadcast %cst_13 : f32 to vector<2x512xf32>
      %17 = arith.maximumf %15, %16 : vector<2x512xf32>
      %18 = arith.truncf %17 : vector<2x512xf32> to vector<2x512xbf16>
      %c0_14 = arith.constant 0 : index
      %c0_15 = arith.constant 0 : index
      %19 = vector.load %arg4[%c0_14, %c0_15] : memref<512x256xbf16, #tpu.memory_space<vmem>>, vector<512x256xbf16>
      %cst_16 = arith.constant dense<0.000000e+00> : vector<2x256xf32>
      %20 = tpu.matmul %18, %19, %cst_16 {dimension_numbers = #tpu.dot_dimension_numbers<[1], [0], [0], [1], [0, 0, 1, 1], [], []>} : vector<2x512xbf16>, vector<512x256xbf16>, vector<2x256xf32> -> vector<2x256xf32>
      %c0_17 = arith.constant 0 : index
      %c0_18 = arith.constant 0 : index
      %21 = vector.load %arg5[%c0_17, %c0_18] : memref<1x256xf32, #tpu.memory_space<vmem>>, vector<1x256xf32>
      %22 = vector.broadcast %21 : vector<1x256xf32> to vector<2x256xf32>
      %23 = arith.addf %20, %22 : vector<2x256xf32>
      %cst_19 = arith.constant 0.000000e+00 : f32
      %24 = vector.broadcast %cst_19 : f32 to vector<2x256xf32>
      %25 = arith.maximumf %23, %24 : vector<2x256xf32>
      %26 = arith.truncf %25 : vector<2x256xf32> to vector<2x256xbf16>
      %c0_20 = arith.constant 0 : index
      %c0_21 = arith.constant 0 : index
      %27 = vector.load %arg6[%c0_20, %c0_21] : memref<256x6xbf16, #tpu.memory_space<vmem>>, vector<256x6xbf16>
      %cst_22 = arith.constant dense<0.000000e+00> : vector<2x6xf32>
      %28 = tpu.matmul %26, %27, %cst_22 {dimension_numbers = #tpu.dot_dimension_numbers<[1], [0], [0], [1], [0, 0, 1, 1], [], []>} : vector<2x256xbf16>, vector<256x6xbf16>, vector<2x6xf32> -> vector<2x6xf32>
      %c0_23 = arith.constant 0 : index
      %c0_24 = arith.constant 0 : index
      %29 = vector.load %arg7[%c0_23, %c0_24] : memref<1x6xf32, #tpu.memory_space<vmem>>, vector<1x6xf32>
      %30 = vector.broadcast %29 : vector<1x6xf32> to vector<2x6xf32>
      %31 = arith.addf %28, %30 : vector<2x6xf32>
      %c0_25 = arith.constant 0 : index
      %c0_26 = arith.constant 0 : index
      %32 = vector.load %arg8[%c0_25, %c0_26] : memref<2x6xf32, #tpu.memory_space<vmem>>, vector<2x6xf32>
      tpu.vector_store %arg8[%c0_25, %c0_26], %31 {strides = array<i32>} : memref<2x6xf32, #tpu.memory_space<vmem>>, vector<2x6xf32>,
    } else {
    }
    return
  }
  func.func @transform_0(%arg0: i32) -> (i32, i32) {
    %c0_i32 = arith.constant 0 : i32
    %c0_i32_0 = arith.constant 0 : i32
    return %c0_i32, %arg0 : i32, i32
  }
  func.func @transform_1(%arg0: i32) -> (i32, i32) {
    %c0_i32 = arith.constant 0 : i32
    %c0_i32_0 = arith.constant 0 : i32
    return %arg0, %c0_i32 : i32, i32
  }
  func.func @transform_2(%arg0: i32) -> (i32, i32) {
    %c0_i32 = arith.constant 0 : i32
    %c0_i32_0 = arith.constant 0 : i32
    %c0_i32_1 = arith.constant 0 : i32
    return %c0_i32, %c0_i32_0 : i32, i32
  }
  func.func @transform_3(%arg0: i32) -> (i32, i32) {
    %c0_i32 = arith.constant 0 : i32
    %c0_i32_0 = arith.constant 0 : i32
    %c0_i32_1 = arith.constant 0 : i32
    return %c0_i32, %c0_i32_0 : i32, i32
  }
  func.func @transform_4(%arg0: i32) -> (i32, i32) {
    %c0_i32 = arith.constant 0 : i32
    %c0_i32_0 = arith.constant 0 : i32
    %c0_i32_1 = arith.constant 0 : i32
    return %c0_i32, %c0_i32_0 : i32, i32
  }
  func.func @transform_5(%arg0: i32) -> (i32, i32) {
    %c0_i32 = arith.constant 0 : i32
    %c0_i32_0 = arith.constant 0 : i32
    %c0_i32_1 = arith.constant 0 : i32
    return %c0_i32, %c0_i32_0 : i32, i32
  }
  func.func @transform_6(%arg0: i32) -> (i32, i32) {
    %c0_i32 = arith.constant 0 : i32
    %c0_i32_0 = arith.constant 0 : i32
    %c0_i32_1 = arith.constant 0 : i32
    return %c0_i32, %c0_i32_0 : i32, i32
  }
  func.func @transform_7(%arg0: i32) -> (i32, i32) {
    %c0_i32 = arith.constant 0 : i32
    %c0_i32_0 = arith.constant 0 : i32
    %c0_i32_1 = arith.constant 0 : i32
    return %c0_i32, %c0_i32_0 : i32, i32
  }
}

</mosaic_0001>

<bundles_post_ra>
// kernel: dqn_forward.3
= control target key start
LH: loop header
LB: loop body
LE: loop exit
PB: predicated region body
PF: predicated region fallthrough
CT: control target
= control target key end

     0   :  { %s1189_s12 = smov 0   ;;  %s1191_s13 = smov 0   ;;  %s1447_s0 = inlined_call_operand.vmem [shape: bf16[16,256], index: 0, kind: input, shape index: {}]   ;;  %s1448_s1 = inlined_call_operand.vmem [shape: bf16[256,1152], index: 1, kind: input, shape index: {}]   ;;  %s1449_s2 = inlined_call_operand.vmem [shape: f32[16,1], index: 2, kind: input, shape index: {}]   ;;  %s1450_s3 = inlined_call_operand.vmem [shape: bf16[16,1152], index: 3, kind: output, shape index: {}]  }
   0x1   :  { %s1193_s14 = smov 0  }
   0x2 LB: > { %s889_s15 = sadd.s32 4294967295, %s1166_s14   ;;  %s1206_s16 = sadd.s32 1, %s1166_s14   ;;  %s1166_s14 = sphi %s1193_s14, %s1454_s14   ;;  %s1162_s13 = sphi %s1191_s13, %s1453_s13   ;;  %s1158_s12 = sphi %s1189_s12, %s1452_s12  }
   0x3   : > { %s38_s17 = ssub.s32 %s1166_s14, %s1206_s16  ;;  %s41_s18 = sadd.s32 1, %s1162_s13 }
   0x4   : > { %p39_p0 = scmp.eq.s32.totalorder %s38_s17, 0  ;;  %p48_p1 = scmp.ne.s32.totalorder %s1162_s13, %s1158_s12 }
   0x5   : > { %p49_p2 = scmp.eq.s32.totalorder %s1166_s14, 0  ;;  %p99_p3 = scmp.eq.s32.totalorder %s889_s15, 2 }
   0x6   : > { %s1217_s19 = scalar_select %p39_p0, %s1162_s13, %s41_s18  }
   0x7   : > { %p50_p4 = por %p49_p2, %p48_p1  ;;  %p1219_p5 = por %p99_p3, %p48_p1 }
   0x8   : > { %p892_p6 = scmp.ge.s32.totalorder %s1166_s14, 3 }
   0xa   : > { %127 = sbr.rel (%p892_p6) target bundleno = 57 (0x39), region = 24 }
   0xf   : > { %130 = sbr.rel (!%p50_p4) target bundleno = 57 (0x39), region = 28  ;;  %s132_s21 = sand.u32 (%p50_p4), 1, %s1162_s13  }
  0x10   : > { %s1020_s22 = smul.u32 (%p50_p4), 12, %s1166_s14 }
  0x11   : > { %s1048_s23 = smul.u32 (%p50_p4), 384, %s132_s21 }
  0x12   : > { %s1229_s26 = scalar_lea.vmem (%p50_p4), %s1448_s1, %s1020_s22 }
  0x13   : > { %v152_v0 = vld [vmem:[%s1229_s26] sm:$0xff] (%p50_p4)  ;;  %v156_v2 = vld [vmem:[%s1229_s26 + $0x48] sm:$0xff] (%p50_p4)  ;;  %s1234_s27 = scalar_lea.vmem (%p50_p4), [#allocation2], %s1048_s23  ;;  %v160_v4 = vld [vmem:[%s1229_s26 + $0x90] sm:$0xff] (%p50_p4) }
  0x14   : > { %v154_v1 = vld [vmem:[%s1229_s26 + $0x24] sm:$0xff]  ;;  %153 = vst [vmem:[%s1234_s27] sm:$0xff] %v152_v0  ;;  %157 = vst [vmem:[%s1234_s27 + $0x18] sm:$0xff] %v156_v2  ;;  %v158_v3 = vld [vmem:[%s1229_s26 + $0x6c] sm:$0xff] }
  0x15   : > { %155 = vst [vmem:[%s1234_s27 + $0xc] sm:$0xff] %v154_v1  ;;  %v162_v5 = vld [vmem:[%s1229_s26 + $0xb4] sm:$0xff]  ;;  %159 = vst [vmem:[%s1234_s27 + $0x24] sm:$0xff] %v158_v3  ;;  %v166_v7 = vld [vmem:[%s1229_s26 + $0xfc] sm:$0xff] }
  0x16   : > { %161 = vst [vmem:[%s1234_s27 + $0x30] sm:$0xff] %v160_v4  ;;  %163 = vst [vmem:[%s1234_s27 + $0x3c] sm:$0xff] %v162_v5  ;;  %v164_v6 = vld [vmem:[%s1229_s26 + $0xd8] sm:$0xff]  ;;  %v168_v8 = vld [vmem:[%s1229_s26 + $0x120] sm:$0xff] }
  0x17   : > { %165 = vst [vmem:[%s1234_s27 + $0x48] sm:$0xff] %v164_v6  ;;  %167 = vst [vmem:[%s1234_s27 + $0x54] sm:$0xff] %v166_v7  ;;  %v170_v9 = vld [vmem:[%s1229_s26 + $0x144] sm:$0xff]  ;;  %v174_v11 = vld [vmem:[%s1229_s26 + $0x18c] sm:$0xff] }
  0x18   : > { %169 = vst [vmem:[%s1234_s27 + $0x60] sm:$0xff] %v168_v8  ;;  %v172_v10 = vld [vmem:[%s1229_s26 + $0x168] sm:$0xff]  ;;  %171 = vst [vmem:[%s1234_s27 + $0x6c] sm:$0xff] %v170_v9  ;;  %v176_v12 = vld [vmem:[%s1229_s26 + $0x1b0] sm:$0xff] }
  0x19   : > { %173 = vst [vmem:[%s1234_s27 + $0x78] sm:$0xff] %v172_v10  ;;  %175 = vst [vmem:[%s1234_s27 + $0x84] sm:$0xff] %v174_v11  ;;  %v178_v13 = vld [vmem:[%s1229_s26 + $0x1d4] sm:$0xff]  ;;  %v182_v15 = vld [vmem:[%s1229_s26 + $0x21c] sm:$0xff] }
  0x1a   : > { %v180_v14 = vld [vmem:[%s1229_s26 + $0x1f8] sm:$0xff]  ;;  %177 = vst [vmem:[%s1234_s27 + $0x90] sm:$0xff] %v176_v12  ;;  %179 = vst [vmem:[%s1234_s27 + $0x9c] sm:$0xff] %v178_v13  ;;  %v184_v16 = vld [vmem:[%s1229_s26 + $0x240] sm:$0xff] }
  0x1b   : > { %181 = vst [vmem:[%s1234_s27 + $0xa8] sm:$0xff] %v180_v14  ;;  %v186_v17 = vld [vmem:[%s1229_s26 + $0x264] sm:$0xff]  ;;  %183 = vst [vmem:[%s1234_s27 + $0xb4] sm:$0xff] %v182_v15  ;;  %v190_v19 = vld [vmem:[%s1229_s26 + $0x2ac] sm:$0xff] }
  0x1c   : > { %185 = vst [vmem:[%s1234_s27 + $0xc0] sm:$0xff] %v184_v16  ;;  %187 = vst [vmem:[%s1234_s27 + $0xcc] sm:$0xff] %v186_v17  ;;  %v188_v18 = vld [vmem:[%s1229_s26 + $0x288] sm:$0xff]  ;;  %v192_v20 = vld [vmem:[%s1229_s26 + $0x2d0] sm:$0xff] }
  0x1d   : > { %189 = vst [vmem:[%s1234_s27 + $0xd8] sm:$0xff] %v188_v18  ;;  %191 = vst [vmem:[%s1234_s27 + $0xe4] sm:$0xff] %v190_v19  ;;  %v194_v21 = vld [vmem:[%s1229_s26 + $0x2f4] sm:$0xff]  ;;  %v198_v23 = vld [vmem:[%s1229_s26 + $0x33c] sm:$0xff] }
  0x1e   : > { %193 = vst [vmem:[%s1234_s27 + $0xf0] sm:$0xff] %v192_v20  ;;  %v196_v22 = vld [vmem:[%s1229_s26 + $0x318] sm:$0xff]  ;;  %195 = vst [vmem:[%s1234_s27 + $0xfc] sm:$0xff] %v194_v21  ;;  %v200_v24 = vld [vmem:[%s1229_s26 + $0x360] sm:$0xff] }
  0x1f   : > { %197 = vst [vmem:[%s1234_s27 + $0x108] sm:$0xff] %v196_v22  ;;  %199 = vst [vmem:[%s1234_s27 + $0x114] sm:$0xff] %v198_v23  ;;  %v202_v25 = vld [vmem:[%s1229_s26 + $0x384] sm:$0xff]  ;;  %v206_v27 = vld [vmem:[%s1229_s26 + $0x3cc] sm:$0xff] }
  0x20   : > { %v204_v26 = vld [vmem:[%s1229_s26 + $0x3a8] sm:$0xff]  ;;  %201 = vst [vmem:[%s1234_s27 + $0x120] sm:$0xff] %v200_v24  ;;  %203 = vst [vmem:[%s1234_s27 + $0x12c] sm:$0xff] %v202_v25  ;;  %v208_v28 = vld [vmem:[%s1229_s26 + $0x3f0] sm:$0xff] }
  0x21   : > { %205 = vst [vmem:[%s1234_s27 + $0x138] sm:$0xff] %v204_v26  ;;  %v210_v29 = vld [vmem:[%s1229_s26 + $0x414] sm:$0xff]  ;;  %207 = vst [vmem:[%s1234_s27 + $0x144] sm:$0xff] %v206_v27  ;;  %v214_v31 = vld [vmem:[%s1229_s26 + $0x45c] sm:$0xff] }
  0x22   : > { %209 = vst [vmem:[%s1234_s27 + $0x150] sm:$0xff] %v208_v28  ;;  %211 = vst [vmem:[%s1234_s27 + $0x15c] sm:$0xff] %v210_v29  ;;  %v212_v30 = vld [vmem:[%s1229_s26 + $0x438] sm:$0xff]  ;;  %v894_v32 = vld [vmem:[%s1229_s26 + $0x8] sm:$0xf] }
  0x23   : > { %213 = vst [vmem:[%s1234_s27 + $0x168] sm:$0xff] %v212_v30  ;;  %215 = vst [vmem:[%s1234_s27 + $0x174] sm:$0xff] %v214_v31  ;;  %v896_v33 = vld [vmem:[%s1229_s26 + $0x2c] sm:$0xf]  ;;  %v898_v34 = vld [vmem:[%s1229_s26 + $0x50] sm:$0xf] }
  0x24   : > { %895 = vst [vmem:[%s1234_s27 + $0x8] sm:$0xf] %v894_v32  ;;  %v900_v35 = vld [vmem:[%s1229_s26 + $0x74] sm:$0xf]  ;;  %897 = vst [vmem:[%s1234_s27 + $0x14] sm:$0xf] %v896_v33 }
  0x25   : > { %899 = vst [vmem:[%s1234_s27 + $0x20] sm:$0xf] %v898_v34  ;;  %901 = vst [vmem:[%s1234_s27 + $0x2c] sm:$0xf] %v900_v35  ;;  %v902_v36 = vld [vmem:[%s1229_s26 + $0x98] sm:$0xf] }
  0x26   : > { %v904_v37 = vld [vmem:[%s1229_s26 + $0xbc] sm:$0xf]  ;;  %v906_v38 = vld [vmem:[%s1229_s26 + $0xe0] sm:$0xf]  ;;  %903 = vst [vmem:[%s1234_s27 + $0x38] sm:$0xf] %v902_v36 }
  0x27   : > { %905 = vst [vmem:[%s1234_s27 + $0x44] sm:$0xf] %v904_v37  ;;  %907 = vst [vmem:[%s1234_s27 + $0x50] sm:$0xf] %v906_v38  ;;  %v908_v39 = vld [vmem:[%s1229_s26 + $0x104] sm:$0xf] }
  0x28   : > { %v910_v40 = vld [vmem:[%s1229_s26 + $0x128] sm:$0xf]  ;;  %v912_v41 = vld [vmem:[%s1229_s26 + $0x14c] sm:$0xf]  ;;  %909 = vst [vmem:[%s1234_s27 + $0x5c] sm:$0xf] %v908_v39 }
  0x29   : > { %911 = vst [vmem:[%s1234_s27 + $0x68] sm:$0xf] %v910_v40  ;;  %913 = vst [vmem:[%s1234_s27 + $0x74] sm:$0xf] %v912_v41  ;;  %v914_v42 = vld [vmem:[%s1229_s26 + $0x170] sm:$0xf] }
  0x2a   : > { %v916_v43 = vld [vmem:[%s1229_s26 + $0x194] sm:$0xf]  ;;  %v918_v44 = vld [vmem:[%s1229_s26 + $0x1b8] sm:$0xf]  ;;  %915 = vst [vmem:[%s1234_s27 + $0x80] sm:$0xf] %v914_v42 }
  0x2b   : > { %917 = vst [vmem:[%s1234_s27 + $0x8c] sm:$0xf] %v916_v43  ;;  %919 = vst [vmem:[%s1234_s27 + $0x98] sm:$0xf] %v918_v44  ;;  %v920_v45 = vld [vmem:[%s1229_s26 + $0x1dc] sm:$0xf] }
  0x2c   : > { %v922_v46 = vld [vmem:[%s1229_s26 + $0x200] sm:$0xf]  ;;  %v924_v47 = vld [vmem:[%s1229_s26 + $0x224] sm:$0xf]  ;;  %921 = vst [vmem:[%s1234_s27 + $0xa4] sm:$0xf] %v920_v45 }
  0x2d   : > { %923 = vst [vmem:[%s1234_s27 + $0xb0] sm:$0xf] %v922_v46  ;;  %925 = vst [vmem:[%s1234_s27 + $0xbc] sm:$0xf] %v924_v47  ;;  %v926_v48 = vld [vmem:[%s1229_s26 + $0x248] sm:$0xf] }
  0x2e   : > { %v928_v49 = vld [vmem:[%s1229_s26 + $0x26c] sm:$0xf]  ;;  %v930_v50 = vld [vmem:[%s1229_s26 + $0x290] sm:$0xf]  ;;  %927 = vst [vmem:[%s1234_s27 + $0xc8] sm:$0xf] %v926_v48 }
  0x2f   : > { %929 = vst [vmem:[%s1234_s27 + $0xd4] sm:$0xf] %v928_v49  ;;  %931 = vst [vmem:[%s1234_s27 + $0xe0] sm:$0xf] %v930_v50  ;;  %v932_v51 = vld [vmem:[%s1229_s26 + $0x2b4] sm:$0xf] }
  0x30   : > { %v934_v52 = vld [vmem:[%s1229_s26 + $0x2d8] sm:$0xf]  ;;  %v936_v53 = vld [vmem:[%s1229_s26 + $0x2fc] sm:$0xf]  ;;  %933 = vst [vmem:[%s1234_s27 + $0xec] sm:$0xf] %v932_v51 }
  0x31   : > { %935 = vst [vmem:[%s1234_s27 + $0xf8] sm:$0xf] %v934_v52  ;;  %937 = vst [vmem:[%s1234_s27 + $0x104] sm:$0xf] %v936_v53  ;;  %v938_v54 = vld [vmem:[%s1229_s26 + $0x320] sm:$0xf] }
  0x32   : > { %v940_v55 = vld [vmem:[%s1229_s26 + $0x344] sm:$0xf]  ;;  %v942_v56 = vld [vmem:[%s1229_s26 + $0x368] sm:$0xf]  ;;  %939 = vst [vmem:[%s1234_s27 + $0x110] sm:$0xf] %v938_v54 }
  0x33   : > { %941 = vst [vmem:[%s1234_s27 + $0x11c] sm:$0xf] %v940_v55  ;;  %943 = vst [vmem:[%s1234_s27 + $0x128] sm:$0xf] %v942_v56  ;;  %v944_v57 = vld [vmem:[%s1229_s26 + $0x38c] sm:$0xf] }
  0x34   : > { %v946_v58 = vld [vmem:[%s1229_s26 + $0x3b0] sm:$0xf]  ;;  %v948_v59 = vld [vmem:[%s1229_s26 + $0x3d4] sm:$0xf]  ;;  %945 = vst [vmem:[%s1234_s27 + $0x134] sm:$0xf] %v944_v57 }
  0x35   : > { %947 = vst [vmem:[%s1234_s27 + $0x140] sm:$0xf] %v946_v58  ;;  %949 = vst [vmem:[%s1234_s27 + $0x14c] sm:$0xf] %v948_v59  ;;  %v950_v60 = vld [vmem:[%s1229_s26 + $0x3f8] sm:$0xf] }
  0x36   : > { %v952_v61 = vld [vmem:[%s1229_s26 + $0x41c] sm:$0xf]  ;;  %v954_v62 = vld [vmem:[%s1229_s26 + $0x440] sm:$0xf]  ;;  %951 = vst [vmem:[%s1234_s27 + $0x158] sm:$0xf] %v950_v60 }
  0x37   : > { %953 = vst [vmem:[%s1234_s27 + $0x164] sm:$0xf] %v952_v61  ;;  %955 = vst [vmem:[%s1234_s27 + $0x170] sm:$0xf] %v954_v62  ;;  %v956_v63 = vld [vmem:[%s1229_s26 + $0x464] sm:$0xf] }
  0x38   : > { %957 = vst [vmem:[%s1234_s27 + $0x17c] sm:$0xf] %v956_v63 }
  0x39 PF: > { %p958_p7 = scmp.ge.s32.totalorder %s1166_s14, 1  ;;  %p292_p8 = scmp.lt.s32.totalorder %s1166_s14, 4 }
  0x3b   : > { %p293_p9 = pnand %p958_p7, %p292_p8 }
  0x3c   : > { %s299_s28 = sand.u32 (!%p293_p9), 1, %s1158_s12  }
  0x3d   : > { %296 = sbr.rel (%p293_p9) target bundleno = 347 (0x15b), region = 54 }
  0x3e   : > { %s1049_s29 = smul.u32 (!%p293_p9), 384, %s299_s28 }
  0x3f   : > { %s1050_s17 = smul.u32 (!%p293_p9), 24, %s299_s28 }
  0x40   : > { %s1375_s9 = scalar_lea.vmem (!%p293_p9), [#allocation2], %s1049_s29 }
  0x41   : > { %s320_s18 = scalar_lea.vmem (!%p293_p9), [#allocation3], %s1050_s17 }
  0x42   : > { %v1137_v0 = vld [vmem:[%s1447_s0 + $0x4] ss:$8 sps:$4 sm:$0xff]   ;;  %v1168_v1 = vmov 0   ;;  %v1079_v5 = vld [vmem:[%s1375_s9 + $0xa8] ss:$12 sps:$4 sm:$0xff]   ;;  %s1025_s12 = smul.u32 (%p1219_p5), 12, %s889_s15 }
  0x43   : > { %1076 = vset.pattern.permute.xlu0 %v1168_v1  ;;  %v390_v2 = vld [vmem:[%s1449_s2] sm:$0xff]  ;;  %743 = vmatprep.mubr.bf16.mxu1 %v1137_v0  ;;  %v391_v3 = vld [vmem:[%s1449_s2 + $0x8] sm:$0xff]  ;;  %v1082_v7 = vld [vmem:[%s1375_s9 + $0x90] ss:$12 sps:$4 sm:$0xff]  }
  0x44   : > { %394 = vperm.xlu0 %1076, %v390_v2   ;;  %700 = vmatprep.mubr.bf16.mxu0 %v1137_v0  ;;  %v1077_v4 = vld [vmem:[%s1375_s9 + $0xac] ss:$12 sps:$4 sm:$0xff]   ;;  %v1080_v6 = vld [vmem:[%s1375_s9 + $0x94] ss:$12 sps:$4 sm:$0xff]   ;;  %v1083_v8 = vld [vmem:[%s1375_s9 + $0x7c] ss:$12 sps:$4 sm:$0xff]   ;;  %s791_s23 = scalar_lea.vmem (%p1219_p5), %s1450_s3, %s1025_s12 }
  0x45   : > { %668 = vmatprep.subr.bf16.mxu0 %v1077_v4  ;;  %v1085_v9 = vld [vmem:[%s1375_s9 + $0x78] ss:$12 sps:$4 sm:$0xff]   ;;  %v1097_v11 = vld [vmem:[%s1375_s9 + $0x170] ss:$12 sps:$4 sm:$0xff]   ;;  %v1088_v12 = vld [vmem:[%s1375_s9 + $0x60] ss:$12 sps:$4 sm:$0xff]  }
  0x46   : > { %669 = vmatpush1.bf16.msra.mxu0 %v1079_v5  ;;  %v1086_v10 = vld [vmem:[%s1375_s9 + $0x64] ss:$12 sps:$4 sm:$0xff]   ;;  %1026 = vmatprep.subr.bf16.mxu1 %v1097_v11  ;;  %v1089_v14 = vld [vmem:[%s1375_s9 + $0x4c] ss:$12 sps:$4 sm:$0xff]   ;;  %v1091_v17 = vld [vmem:[%s1375_s9 + $0x48] ss:$12 sps:$4 sm:$0xff]  }
  0x47   : > { %670 = vmatprep.subr.bf16.mxu0 %v1080_v6  ;;  %v1099_v13 = vld [vmem:[%s1375_s9 + $0xb0] ss:$12 sps:$4 sm:$0xff]   ;;  %v1102_v15 = vld [vmem:[%s1375_s9 + $0x158] ss:$12 sps:$4 sm:$0xff]   ;;  %v1092_v18 = vld [vmem:[%s1375_s9 + $0x34] ss:$12 sps:$4 sm:$0xff]  }
  0x48   : > { %399 = vperm.xlu0 %1076, %v391_v3   ;;  %1027 = vmatpush3.bf16.msra.mxu1 %v1099_v13  ;;  %v1104_v16 = vld [vmem:[%s1375_s9 + $0x98] ss:$12 sps:$4 sm:$0xff]   ;;  %v1107_v19 = vld [vmem:[%s1375_s9 + $0x140] ss:$12 sps:$4 sm:$0xff]   ;;  %v1094_v21 = vld [vmem:[%s1375_s9 + $0x30] ss:$12 sps:$4 sm:$0xff]  }
  0x49   : > { %1028 = vmatprep.subr.bf16.mxu1 %v1102_v15  ;;  %v1109_v20 = vld [vmem:[%s1375_s9 + $0x80] ss:$12 sps:$4 sm:$0xff]   ;;  %v1112_v22 = vld [vmem:[%s1375_s9 + $0x128] ss:$12 sps:$4 sm:$0xff]   ;;  %v1098_v25 = vld [vmem:[%s1375_s9 + $0x18] ss:$12 sps:$4 sm:$0xff]  }
  0x4a   : > { %671 = vmatpush1.bf16.msra.mxu0 %v1082_v7  ;;  %v1095_v23 = vld [vmem:[%s1375_s9 + $0x1c] ss:$12 sps:$4 sm:$0xff]   ;;  %v1100_v27 = vld [vmem:[%s1375_s9 + $0x4] ss:$12 sps:$4 sm:$0xff]   ;;  %v1103_v30 = vld [vmem:[%s1375_s9] ss:$12 sps:$4 sm:$0xff]  }
  0x4b   : > { %672 = vmatprep.subr.bf16.mxu0 %v1083_v8  ;;  %v1114_v24 = vld [vmem:[%s1375_s9 + $0x68] ss:$12 sps:$4 sm:$0xff]   ;;  %v1117_v26 = vld [vmem:[%s1375_s9 + $0x110] ss:$12 sps:$4 sm:$0xff]   ;;  %v1122_v29 = vld [vmem:[%s1375_s9 + $0xf8] ss:$12 sps:$4 sm:$0xff]  }
  0x4c   : > { %1029 = vmatpush3.bf16.msra.mxu1 %v1104_v16  ;;  %v1119_v28 = vld [vmem:[%s1375_s9 + $0x50] ss:$12 sps:$4 sm:$0xff]   ;;  %v1105_v31 = vld [vmem:[%s1375_s9 + $0x16c] ss:$12 sps:$4 sm:$0xff]   ;;  %v1108_v34 = vld [vmem:[%s1375_s9 + $0x168] ss:$12 sps:$4 sm:$0xff]  }
  0x4d   : > { %1030 = vmatprep.subr.bf16.mxu1 %v1107_v19  ;;  %v1124_v32 = vld [vmem:[%s1375_s9 + $0x38] ss:$12 sps:$4 sm:$0xff]   ;;  %v1127_v33 = vld [vmem:[%s1375_s9 + $0xe0] ss:$12 sps:$4 sm:$0xff]   ;;  %v1132_v37 = vld [vmem:[%s1375_s9 + $0xc8] ss:$12 sps:$4 sm:$0xff]  }
  0x4e   : > { %673 = vmatpush1.bf16.msra.mxu0 %v1085_v9  ;;  %v1110_v35 = vld [vmem:[%s1375_s9 + $0x154] ss:$12 sps:$4 sm:$0xff]   ;;  %v1113_v38 = vld [vmem:[%s1375_s9 + $0x150] ss:$12 sps:$4 sm:$0xff]   ;;  %v1118_v41 = vld [vmem:[%s1375_s9 + $0x138] ss:$12 sps:$4 sm:$0xff]  }
  0x4f   : > { %674 = vmatprep.subr.bf16.mxu0 %v1086_v10  ;;  %v1129_v36 = vld [vmem:[%s1375_s9 + $0x20] ss:$12 sps:$4 sm:$0xff]   ;;  %v1115_v39 = vld [vmem:[%s1375_s9 + $0x13c] ss:$12 sps:$4 sm:$0xff]   ;;  %v1120_v42 = vld [vmem:[%s1375_s9 + $0x124] ss:$12 sps:$4 sm:$0xff]  }
  0x50   : > { %1031 = vmatpush3.bf16.msra.mxu1 %v1109_v20  ;;  %v1134_v40 = vld [vmem:[%s1375_s9 + $0x8] ss:$12 sps:$4 sm:$0xff]   ;;  %v1123_v44 = vld [vmem:[%s1375_s9 + $0x120] ss:$12 sps:$4 sm:$0xff]   ;;  %v1133_v48 = vld [vmem:[%s1375_s9 + $0xf0] ss:$12 sps:$4 sm:$0xff]  }
  0x51   : > { %1032 = vmatprep.subr.bf16.mxu1 %v1112_v22  ;;  %v1135_v43 = vld [vmem:[%s1447_s0] ss:$8 sps:$4 sm:$0xff]   ;;  %v1125_v45 = vld [vmem:[%s1375_s9 + $0x10c] ss:$12 sps:$4 sm:$0xff]   ;;  %v1141_v51 = vld [vmem:[%s1375_s9 + $0xc4] ss:$12 sps:$4 sm:$0xff]  }
  0x52   : > { %675 = vmatpush1.bf16.msra.mxu0 %v1088_v12  ;;  %v1128_v46 = vld [vmem:[%s1375_s9 + $0x108] ss:$12 sps:$4 sm:$0xff]   ;;  %v1140_v50 = vld [vmem:[%s1375_s9 + $0xd8] ss:$12 sps:$4 sm:$0xff]   ;;  %v1143_v52 = vld [vmem:[%s1375_s9 + $0xc0] ss:$12 sps:$4 sm:$0xff]  }
  0x53   : > { %676 = vmatprep.subr.bf16.mxu0 %v1089_v14  ;;  %v1130_v47 = vld [vmem:[%s1375_s9 + $0xf4] ss:$12 sps:$4 sm:$0xff]   ;;  %v1138_v49 = vld [vmem:[%s1375_s9 + $0xdc] ss:$12 sps:$4 sm:$0xff]  }
  0x54   : > { %1033 = vmatpush3.bf16.msra.mxu1 %v1114_v24 }
  0x55   : > { %1034 = vmatprep.subr.bf16.mxu1 %v1117_v26 }
  0x56   : > { %677 = vmatpush1.bf16.msra.mxu0 %v1091_v17 }
  0x57   : > { %678 = vmatprep.subr.bf16.mxu0 %v1092_v18 }
  0x58   : > { %1035 = vmatpush3.bf16.msra.mxu1 %v1119_v28 }
  0x59   : > { %1036 = vmatprep.subr.bf16.mxu1 %v1122_v29 }
  0x5a   : > { %679 = vmatpush1.bf16.msra.mxu0 %v1094_v21 }
  0x5b   : > { %680 = vmatprep.subr.bf16.mxu0 %v1095_v23 }
  0x5c   : > { %1037 = vmatpush3.bf16.msra.mxu1 %v1124_v32 }
  0x5d   : > { %1038 = vmatprep.subr.bf16.mxu1 %v1127_v33 }
  0x5e   : > { %681 = vmatpush1.bf16.msra.mxu0 %v1098_v25 }
  0x5f   : > { %682 = vmatprep.subr.bf16.mxu0 %v1100_v27 }
  0x60   : > { %1039 = vmatpush3.bf16.msra.mxu1 %v1129_v36 }
  0x61   : > { %1040 = vmatprep.subr.bf16.mxu1 %v1132_v37 }
  0x62   : > { %683 = vmatpush1.bf16.msra.mxu0 %v1103_v30 }
  0x63   : > { %684 = vmatprep.subr.bf16.mxu0 %v1105_v31 }
  0x64   : > { %1041 = vmatpush3.bf16.msra.mxu1 %v1134_v40 }
  0x66   : > { %685 = vmatpush2.bf16.msra.mxu0 %v1108_v34 }
  0x67   : > { %686 = vmatprep.subr.bf16.mxu0 %v1110_v35  ;;  %744 = vmatmul.mubr.bf16.vlgmr.msra.gmra.mxu1 %v1135_v43 }
  0x6a   : > { %687 = vmatpush2.bf16.msra.mxu0 %v1113_v38 }
  0x6b   : > { %688 = vmatprep.subr.bf16.mxu0 %v1115_v39 }
  0x6e   : > { %689 = vmatpush2.bf16.msra.mxu0 %v1118_v41 }
  0x6f   : > { %690 = vmatprep.subr.bf16.mxu0 %v1120_v42 }
  0x72   : > { %691 = vmatpush2.bf16.msra.mxu0 %v1123_v44 }
  0x73   : > { %692 = vmatprep.subr.bf16.mxu0 %v1125_v45 }
  0x76   : > { %693 = vmatpush2.bf16.msra.mxu0 %v1128_v46 }
  0x77   : > { %694 = vmatprep.subr.bf16.mxu0 %v1130_v47 }
  0x7a   : > { %695 = vmatpush2.bf16.msra.mxu0 %v1133_v48 }
  0x7b   : > { %696 = vmatprep.subr.bf16.mxu0 %v1138_v49 }
  0x7e   : > { %697 = vmatpush2.bf16.msra.mxu0 %v1140_v50 }
  0x7f   : > { %698 = vmatprep.subr.bf16.mxu0 %v1141_v51 }
  0x82   : > { %699 = vmatpush2.bf16.msra.mxu0 %v1143_v52 }
  0x85   : > { %701 = vmatmul.mubr.bf16.vlgmr.msra.gmra.mxu0 %v1135_v43 }
  0xbf   : > { %v395_v54 = vpop.permute.xlu0 %394 }
  0xc3   : > { %v400_v60 = vpop.permute.xlu0 %399 }
 0x127   : > { %v1042_v53 = vpop.f32.mrf.mxu1 }
 0x129   : > { %v1043_v55 = vpop.f32.mrf.mxu1 }
 0x12a   : > { %v1044_v56 = vadd.f32 %v1043_v55, %v1042_v53 }
 0x12b   : > { %v1045_v57 = vpop.f32.mrf.mxu1 }
 0x12c   : > { %v746_v58 = vadd.f32 %v1044_v56, %v395_v54 }
 0x12d   : > { %v1046_v59 = vpop.f32.mrf.mxu1 }
 0x12e   : > { %v754_v61 = vmax.f32 %v746_v58, 0.0  ;;  %v1047_v62 = vadd.f32 %v1046_v59, %v1045_v57 }
 0x130   : > { %v1022_v63 = vpack.c.bf16 %v754_v61, %v754_v61  ;;  %v749_v0 = vadd.f32 %v1047_v62, %v400_v60 }
 0x132   : > { %779 = vst [vmem:[%s320_s18 + $0x8] sm:$0xf] %v1022_v63  ;;  %v757_v1 = vmax.f32 %v749_v0, 0.0 }
 0x134   : > { %v1024_v2 = vpack.c.bf16 %v757_v1, %v757_v1 }
 0x136   : > { %781 = vst [vmem:[%s320_s18 + $0x14] sm:$0xf] %v1024_v2 }
 0x139   : > { %v1014_v19 = vld [vmem:[%s320_s18 + $0x8] sm:$0xf] (%p1219_p5) }
 0x13a   : > { %1015 = vst [vmem:[%s791_s23 + $0x8] sm:$0xf] (%p1219_p5), %v1014_v19 }
 0x13d   : > { %v1016_v20 = vld [vmem:[%s320_s18 + $0x14] sm:$0xf] (%p1219_p5) }
 0x13e   : > { %1017 = vst [vmem:[%s791_s23 + $0x2c] sm:$0xf] (%p1219_p5), %v1016_v20 }
 0x145   : > { %v702_v3 = vpop.f32.mrf.mxu0 }
 0x146   : > { %v703_v4 = vadd.f32 %v702_v3, %v395_v54 }
 0x147   : > { %v704_v5 = vpop.f32.mrf.mxu0 }
 0x148   : > { %v705_v6 = vadd.f32 %v704_v5, %v395_v54  ;;  %v752_v8 = vmax.f32 %v703_v4, 0.0 }
 0x149   : > { %v706_v7 = vpop.f32.mrf.mxu0 }
 0x14a   : > { %v753_v9 = vmax.f32 %v705_v6, 0.0  ;;  %v707_v10 = vadd.f32 %v706_v7, %v400_v60 }
 0x14b   : > { %v708_v11 = vpop.f32.mrf.mxu0 }
 0x14c   : > { %v1021_v12 = vpack.c.bf16 %v753_v9, %v752_v8  ;;  %v709_v13 = vadd.f32 %v708_v11, %v400_v60  ;;  %v755_v14 = vmax.f32 %v707_v10, 0.0 }
 0x14e   : > { %778 = vst [vmem:[%s320_s18] sm:$0xff] %v1021_v12  ;;  %v756_v15 = vmax.f32 %v709_v13, 0.0  ;;  %788 = sbr.rel (!%p1219_p5) target bundleno = 347 (0x15b), region = 62 }
 0x150   : > { %v1023_v16 = vpack.c.bf16 %v756_v15, %v755_v14 }
 0x152   : > { %780 = vst [vmem:[%s320_s18 + $0xc] sm:$0xff] %v1023_v16 }
 0x155   : > { %v806_v17 = vld [vmem:[%s320_s18] sm:$0xff] }
 0x156   : > { %807 = vst [vmem:[%s791_s23] sm:$0xff] %v806_v17 }
 0x159   : > { %v808_v18 = vld [vmem:[%s320_s18 + $0xc] sm:$0xff] }
 0x15a   : > { %809 = vst [vmem:[%s791_s23 + $0x24] sm:$0xff] %v808_v18 }
 0x15b PF: > { %p10_p10 = scmp.ge.s32.totalorder %s1206_s16, 5   ;;  %s1452_s12 = smov %s1162_s13 }
 0x15c   : > { %s1453_s13 = smov %s1217_s19  ;;  %s1454_s14 = smov %s1206_s16 }
 0x15d   :  { %12 = sbr.rel (!%p10_p10) target bundleno = 2 (0x2), region = 131 }

// kernel: dqn_forward.4
= control target key start
LH: loop header
LB: loop body
LE: loop exit
PB: predicated region body
PF: predicated region fallthrough
CT: control target
= control target key end

     0   :  { %v483_v1 = vmov 0   ;;  %vm339_vm0 = vcmask 1043456   ;;  %vm340_vm1 = vcmask 932868   ;;  %s648_s1 = inlined_call_operand.vmem [shape: bf16[256,242], index: 1, kind: input, shape index: {}]   ;;  %s649_s0 = inlined_call_operand.vmem [shape: bf16[32,256], index: 0, kind: input, shape index: {}]   ;;  %s650_s2 = inlined_call_operand.vmem [shape: f32[32,1], index: 2, kind: input, shape index: {}]   ;;  %s651_s3 = inlined_call_operand.vmem [shape: bf16[32,242], index: 3, kind: output, shape index: {}]  }
   0x1   :  { %v429_v0 = vld [vmem:[%s648_s1 + $0x74] ss:$8 sps:$4 sm:$0xff]   ;;  %428 = vset.pattern.permute.xlu1 %v483_v1  ;;  %427 = vset.pattern.permute.xlu0 %v483_v1  ;;  %v431_v2 = vld [vmem:[%s648_s1 + $0x70] ss:$8 sps:$4 sm:$0xff]   ;;  %v432_v3 = vld [vmem:[%s648_s1 + $0x64] ss:$8 sps:$4 sm:$0xff]  }
   0x2   :  { %254 = vmatprep.subr.bf16.mxu0 %v429_v0  ;;  %394 = vmatprep.subr.bf16.mxu1 %v429_v0  ;;  %v434_v4 = vld [vmem:[%s648_s1 + $0x60] ss:$8 sps:$4 sm:$0xff]   ;;  %v435_v5 = vld [vmem:[%s648_s1 + $0x54] ss:$8 sps:$4 sm:$0xff]   ;;  %v437_v6 = vld [vmem:[%s648_s1 + $0x50] ss:$8 sps:$4 sm:$0xff]  }
   0x3   :  { %255 = vmatpush1.bf16.msra.mxu0 %v431_v2  ;;  %410 = vmatpush1.bf16.msra.mxu1 %v431_v2  ;;  %v438_v7 = vld [vmem:[%s648_s1 + $0x44] ss:$8 sps:$4 sm:$0xff]   ;;  %v440_v8 = vld [vmem:[%s648_s1 + $0x40] ss:$8 sps:$4 sm:$0xff]   ;;  %v441_v9 = vld [vmem:[%s648_s1 + $0x34] ss:$8 sps:$4 sm:$0xff]  }
   0x4   :  { %256 = vmatprep.subr.bf16.mxu0 %v432_v3  ;;  %395 = vmatprep.subr.bf16.mxu1 %v432_v3  ;;  %v443_v10 = vld [vmem:[%s648_s1 + $0x30] ss:$8 sps:$4 sm:$0xff]   ;;  %v444_v11 = vld [vmem:[%s648_s1 + $0x24] ss:$8 sps:$4 sm:$0xff]   ;;  %v446_v12 = vld [vmem:[%s648_s1 + $0x20] ss:$8 sps:$4 sm:$0xff]  }
   0x5   :  { %v447_v13 = vld [vmem:[%s648_s1 + $0x14] ss:$8 sps:$4 sm:$0xff]   ;;  %v479_v14 = vld [vmem:[%s649_s0 + $0x4] ss:$8 sps:$4 sm:$0xff]   ;;  %v449_v15 = vld [vmem:[%s648_s1 + $0x10] ss:$8 sps:$4 sm:$0xff]  }
   0x6   :  { %v482_v16 = vld [vmem:[%s649_s0 + $0x14] ss:$8 sps:$4 sm:$0xff]   ;;  %v450_v17 = vld [vmem:[%s648_s1 + $0x4] ss:$8 sps:$4 sm:$0xff]   ;;  %286 = vmatprep.mubr.bf16.mxu0 %v479_v14  ;;  %v452_v20 = vld [vmem:[%s648_s1] ss:$8 sps:$4 sm:$0xff]  }
   0x7   :  { %257 = vmatpush1.bf16.msra.mxu0 %v434_v4  ;;  %411 = vmatpush1.bf16.msra.mxu1 %v434_v4  ;;  %v52_v18 = vld [vmem:[%s650_s2 + $0x10] sm:$0xff]  ;;  %v50_v19 = vld [vmem:[%s650_s2] sm:$0xff]  ;;  %v53_v21 = vld [vmem:[%s650_s2 + $0x18] sm:$0xff] }
   0x8   :  { %258 = vmatprep.subr.bf16.mxu0 %v435_v5  ;;  %396 = vmatprep.subr.bf16.mxu1 %v435_v5  ;;  %v51_v22 = vld [vmem:[%s650_s2 + $0x8] sm:$0xff]  ;;  %v453_v23 = vld [vmem:[%s648_s1 + $0xf4] ss:$8 sps:$4 sm:$0xff]   ;;  %v455_v24 = vld [vmem:[%s648_s1 + $0xf0] ss:$8 sps:$4 sm:$0xff]  }
   0x9   :  { %296 = vmatprep.mubr.bf16.mxu1 %v482_v16  ;;  %66 = vperm.xlu1 %428, %v52_v18   ;;  %v456_v25 = vld [vmem:[%s648_s1 + $0xe4] ss:$8 sps:$4 sm:$0xff]   ;;  %v458_v26 = vld [vmem:[%s648_s1 + $0xe0] ss:$8 sps:$4 sm:$0xff]   ;;  %v459_v27 = vld [vmem:[%s648_s1 + $0xd4] ss:$8 sps:$4 sm:$0xff]  }
   0xa   :  { %56 = vperm.xlu0 %427, %v50_v19   ;;  %v461_v28 = vld [vmem:[%s648_s1 + $0xd0] ss:$8 sps:$4 sm:$0xff]   ;;  %v462_v29 = vld [vmem:[%s648_s1 + $0xc4] ss:$8 sps:$4 sm:$0xff]   ;;  %v464_v30 = vld [vmem:[%s648_s1 + $0xc0] ss:$8 sps:$4 sm:$0xff]  }
   0xb   :  { %259 = vmatpush1.bf16.msra.mxu0 %v437_v6  ;;  %412 = vmatpush1.bf16.msra.mxu1 %v437_v6  ;;  %v465_v31 = vld [vmem:[%s648_s1 + $0xb4] ss:$8 sps:$4 sm:$0xff]   ;;  %v467_v32 = vld [vmem:[%s648_s1 + $0xb0] ss:$8 sps:$4 sm:$0xff]   ;;  %v468_v33 = vld [vmem:[%s648_s1 + $0xa4] ss:$8 sps:$4 sm:$0xff]  }
   0xc   :  { %260 = vmatprep.subr.bf16.mxu0 %v438_v7  ;;  %397 = vmatprep.subr.bf16.mxu1 %v438_v7  ;;  %v470_v34 = vld [vmem:[%s648_s1 + $0xa0] ss:$8 sps:$4 sm:$0xff]   ;;  %v471_v35 = vld [vmem:[%s648_s1 + $0x94] ss:$8 sps:$4 sm:$0xff]   ;;  %v473_v36 = vld [vmem:[%s648_s1 + $0x90] ss:$8 sps:$4 sm:$0xff]  }
   0xd   :  { %71 = vperm.xlu1 %428, %v53_v21   ;;  %v474_v37 = vld [vmem:[%s648_s1 + $0x84] ss:$8 sps:$4 sm:$0xff]   ;;  %v476_v38 = vld [vmem:[%s648_s1 + $0x80] ss:$8 sps:$4 sm:$0xff]   ;;  %v480_v40 = vld [vmem:[%s649_s0 + $0x10] ss:$8 sps:$4 sm:$0xff]  }
   0xe   :  { %61 = vperm.xlu0 %427, %v51_v22   ;;  %v477_v39 = vld [vmem:[%s649_s0] ss:$8 sps:$4 sm:$0xff]   ;;  %vm624_vm2 = vmor %vm340_vm1, %vm339_vm0 }
   0xf   :  { %261 = vmatpush1.bf16.msra.mxu0 %v440_v8  ;;  %413 = vmatpush1.bf16.msra.mxu1 %v440_v8 }
  0x10   :  { %262 = vmatprep.subr.bf16.mxu0 %v441_v9  ;;  %398 = vmatprep.subr.bf16.mxu1 %v441_v9 }
  0x13   :  { %263 = vmatpush1.bf16.msra.mxu0 %v443_v10  ;;  %414 = vmatpush1.bf16.msra.mxu1 %v443_v10 }
  0x14   :  { %264 = vmatprep.subr.bf16.mxu0 %v444_v11  ;;  %399 = vmatprep.subr.bf16.mxu1 %v444_v11 }
  0x17   :  { %265 = vmatpush1.bf16.msra.mxu0 %v446_v12  ;;  %415 = vmatpush1.bf16.msra.mxu1 %v446_v12 }
  0x18   :  { %266 = vmatprep.subr.bf16.mxu0 %v447_v13  ;;  %400 = vmatprep.subr.bf16.mxu1 %v447_v13 }
  0x1b   :  { %267 = vmatpush1.bf16.msra.mxu0 %v449_v15  ;;  %416 = vmatpush1.bf16.msra.mxu1 %v449_v15 }
  0x1c   :  { %268 = vmatprep.subr.bf16.mxu0 %v450_v17  ;;  %401 = vmatprep.subr.bf16.mxu1 %v450_v17 }
  0x1f   :  { %269 = vmatpush1.bf16.msra.mxu0 %v452_v20  ;;  %417 = vmatpush1.bf16.msra.mxu1 %v452_v20 }
  0x20   :  { %270 = vmatprep.subr.bf16.mxu0 %v453_v23  ;;  %402 = vmatprep.subr.bf16.mxu1 %v453_v23 }
  0x23   :  { %271 = vmatpush2.bf16.msra.mxu0 %v455_v24  ;;  %418 = vmatpush2.bf16.msra.mxu1 %v455_v24 }
  0x24   :  { %272 = vmatprep.subr.bf16.mxu0 %v456_v25  ;;  %403 = vmatprep.subr.bf16.mxu1 %v456_v25 }
  0x27   :  { %273 = vmatpush2.bf16.msra.mxu0 %v458_v26  ;;  %419 = vmatpush2.bf16.msra.mxu1 %v458_v26 }
  0x28   :  { %274 = vmatprep.subr.bf16.mxu0 %v459_v27  ;;  %404 = vmatprep.subr.bf16.mxu1 %v459_v27 }
  0x2b   :  { %275 = vmatpush2.bf16.msra.mxu0 %v461_v28  ;;  %420 = vmatpush2.bf16.msra.mxu1 %v461_v28 }
  0x2c   :  { %276 = vmatprep.subr.bf16.mxu0 %v462_v29  ;;  %405 = vmatprep.subr.bf16.mxu1 %v462_v29 }
  0x2f   :  { %277 = vmatpush2.bf16.msra.mxu0 %v464_v30  ;;  %421 = vmatpush2.bf16.msra.mxu1 %v464_v30 }
  0x30   :  { %278 = vmatprep.subr.bf16.mxu0 %v465_v31  ;;  %406 = vmatprep.subr.bf16.mxu1 %v465_v31 }
  0x33   :  { %279 = vmatpush2.bf16.msra.mxu0 %v467_v32  ;;  %422 = vmatpush2.bf16.msra.mxu1 %v467_v32 }
  0x34   :  { %280 = vmatprep.subr.bf16.mxu0 %v468_v33  ;;  %407 = vmatprep.subr.bf16.mxu1 %v468_v33 }
  0x37   :  { %281 = vmatpush2.bf16.msra.mxu0 %v470_v34  ;;  %423 = vmatpush2.bf16.msra.mxu1 %v470_v34 }
  0x38   :  { %282 = vmatprep.subr.bf16.mxu0 %v471_v35  ;;  %408 = vmatprep.subr.bf16.mxu1 %v471_v35 }
  0x3b   :  { %283 = vmatpush2.bf16.msra.mxu0 %v473_v36  ;;  %424 = vmatpush2.bf16.msra.mxu1 %v473_v36 }
  0x3c   :  { %284 = vmatprep.subr.bf16.mxu0 %v474_v37  ;;  %409 = vmatprep.subr.bf16.mxu1 %v474_v37 }
  0x3f   :  { %285 = vmatpush2.bf16.msra.mxu0 %v476_v38  ;;  %425 = vmatpush2.bf16.msra.mxu1 %v476_v38 }
  0x42   :  { %287 = vmatmul.mubr.bf16.vlgmr.msra.gmra.mxu0 %v477_v39  ;;  %297 = vmatmul.mubr.bf16.vlgmr.msra.gmra.mxu1 %v480_v40 }
  0x84   :  { %v67_v41 = vpop.permute.xlu1 %66 }
  0x85   :  { %v57_v42 = vpop.permute.xlu0 %56 }
  0x88   :  { %v72_v55 = vpop.permute.xlu1 %71 }
  0x89   :  { %v62_v56 = vpop.permute.xlu0 %61 }
 0x102   :  { %v288_v43 = vpop.f32.mrf.mxu0  ;;  %v298_v44 = vpop.f32.mrf.mxu1 }
 0x103   :  { %v289_v45 = vadd.f32 %v288_v43, %v57_v42  ;;  %v299_v46 = vadd.f32 %v298_v44, %v67_v41 }
 0x104   :  { %v290_v47 = vpop.f32.mrf.mxu0  ;;  %v300_v48 = vpop.f32.mrf.mxu1 }
 0x105   :  { %v291_v49 = vadd.f32 %v290_v47, %v57_v42  ;;  %v301_v50 = vadd.f32 %v300_v48, %v67_v41  ;;  %v307_v53 = vmax.f32 %v289_v45, 0.0  ;;  %v311_v54 = vmax.f32 %v299_v46, 0.0 }
 0x106   :  { %v292_v51 = vpop.f32.mrf.mxu0  ;;  %v302_v52 = vpop.f32.mrf.mxu1 }
 0x107   :  { %v308_v57 = vmax.f32 %v291_v49, 0.0  ;;  %v312_v58 = vmax.f32 %v301_v50, 0.0  ;;  %v293_v60 = vadd.f32 %v292_v51, %v62_v56  ;;  %v303_v61 = vadd.f32 %v302_v52, %v72_v55 }
 0x108   :  { %v294_v62 = vpop.f32.mrf.mxu0  ;;  %v304_v63 = vpop.f32.mrf.mxu1 }
 0x109   :  { %v390_v0 = vpack.c.bf16 %v308_v57, %v307_v53  ;;  %v392_v1 = vpack.c.bf16 %v312_v58, %v311_v54  ;;  %v295_v2 = vadd.f32 %v294_v62, %v62_v56  ;;  %v305_v3 = vadd.f32 %v304_v63, %v72_v55 }
 0x10a   :  { %v309_v4 = vmax.f32 %v293_v60, 0.0  ;;  %v313_v5 = vmax.f32 %v303_v61, 0.0 }
 0x10b   :  { %342 = vst.msk [vmem:[%s651_s3] sm:$0xff] %vm624_vm2, %v390_v0  ;;  %344 = vst.msk [vmem:[%s651_s3 + $0x10] sm:$0xff] %vm624_vm2, %v392_v1  ;;  %v310_v6 = vmax.f32 %v295_v2, 0.0  ;;  %v314_v7 = vmax.f32 %v305_v3, 0.0 }
 0x10d   :  { %v391_v8 = vpack.c.bf16 %v310_v6, %v309_v4  ;;  %v393_v9 = vpack.c.bf16 %v314_v7, %v313_v5 }
 0x10f   :  { %343 = vst.msk [vmem:[%s651_s3 + $0x8] sm:$0xff] %vm624_vm2, %v391_v8  ;;  %345 = vst.msk [vmem:[%s651_s3 + $0x18] sm:$0xff] %vm624_vm2, %v393_v9 }

// kernel: dqn_forward.5
= control target key start
LH: loop header
LB: loop body
LE: loop exit
PB: predicated region body
PF: predicated region fallthrough
CT: control target
= control target key end

     0   :  { %12 = vsyncpa [#allocation4], 0  ;;  %s3995_s24 = smov 0   ;;  %s4609_s0 = inlined_call_operand.vmem [shape: bf16[2,4096], index: 0, kind: input, shape index: {}]   ;;  %s4610_s1 = inlined_call_operand.vmem [shape: bf16[4096,512], index: 1, kind: input, shape index: {}]   ;;  %s4611_s2 = inlined_call_operand.vmem [shape: f32[1,512], index: 2, kind: input, shape index: {}]   ;;  %s4612_s3 = inlined_call_operand.vmem [shape: bf16[512,256], index: 3, kind: input, shape index: {}]   ;;  %s4613_s4 = inlined_call_operand.vmem [shape: f32[1,256], index: 4, kind: input, shape index: {}]   ;;  %s4614_s5 = inlined_call_operand.vmem [shape: bf16[256,6], index: 5, kind: input, shape index: {}]   ;;  %s4615_s6 = inlined_call_operand.vmem [shape: f32[1,6], index: 6, kind: input, shape index: {}]   ;;  %s4616_s7 = inlined_call_operand.hbm [shape: f32[2,6], index: 7, kind: output, shape index: {}]  }
   0x1 LB: > { %s4001_s25 = sadd.s32 4294967295, %s3949_s24   ;;  %p3029_p0 = scmp.ge.s32.totalorder %s3949_s24, 1  ;;  %s3949_s24 = sphi %s3995_s24, %s18_s24  }
   0x2   : > { %p245_p1 = scmp.lt.s32.totalorder %s3949_s24, 5 }
   0x4   : > { %p246_p2 = pnand %p3029_p0, %p245_p1 }
   0x5   : > { %s3030_s26 = sshll.u32 (!%p246_p2), %s4001_s25, 3  ;;  %s3031_s27 = sshll.u32 (!%p246_p2), %s4001_s25, 7 }
   0x6   : > { %249 = sbr.rel (%p246_p2) target bundleno = 969 (0x3c9), region = 48  ;;  %p278_p3 = scmp.lt.s32.totalorder (!%p246_p2), %s3030_s26, 31 }
   0x7   : > { %p283_p4 = scmp.lt.s32.totalorder (!%p246_p2), %s3031_s27, 511  ;;  %p3034_p5 = scmp.ne.s32.totalorder (!%p246_p2), %s4001_s25, 0 }
   0xb   : > { %s4618_s26 = smov (!%p278_p3, %s3030_s26), 31  ;;  %s4620_s27 = smov (!%p283_p4, %s3031_s27), 511 }
   0xc   : > { %s280_s30 = scalar_lea.vmem %s4609_s0, %s4618_s26  ;;  %s3377_s8 = sshll.u32 %s4620_s27, 4 }
   0xd   : > { %s4016_s11 = scalar_lea.vmem %s4610_s1, %s3377_s8  ;;  %293 = sbr.rel (%p3034_p5) target bundleno = 20 (0x14), region = 52 }
  0x12   : > { %v3951_v0 = vmov 0.0  }
  0x13   : > { %294 = vst [vmem:[#allocation2] sm:$0xff] %v3951_v0 }
  0x14 PF: > { %v3418_v1 = vld [vmem:[%s4016_s11 + $0xe4] ss:$16 sps:$4 sm:$0xff]   ;;  %v3422_v3 = vld [vmem:[%s4016_s11 + $0xe0] ss:$16 sps:$4 sm:$0xff]   ;;  %v3952_v37 = vmov 1966171168   ;;  %v558_v39 = vlaneseq }
  0x15   : > { %v3420_v2 = vld [vmem:[%s4016_s11 + $0x2e4] ss:$16 sps:$4 sm:$0xff]   ;;  %1891 = vmatprep.subr.bf16.mxu0 %v3418_v1  ;;  %v3423_v4 = vld [vmem:[%s4016_s11 + $0x2e0] ss:$16 sps:$4 sm:$0xff]   ;;  %v556_v38 = vunpack.c.l.s4 %v3952_v37  ;;  %p3291_p6 = scmp.ne.s32.totalorder %s4001_s25, 3 }
  0x16   : > { %1932 = vmatprep.subr.bf16.mxu1 %v3420_v2  ;;  %v3424_v5 = vld [vmem:[%s4016_s11 + $0xc4] ss:$16 sps:$4 sm:$0xff]   ;;  %1892 = vmatpush1.bf16.msra.mxu0 %v3422_v3  ;;  %v3428_v7 = vld [vmem:[%s4016_s11 + $0xc0] ss:$16 sps:$4 sm:$0xff]   ;;  %v4058_v44 = vshrl.u32 %v558_v39, 7 }
  0x17   : > { %1933 = vmatpush1.bf16.msra.mxu1 %v3423_v4  ;;  %v3426_v6 = vld [vmem:[%s4016_s11 + $0x2c4] ss:$16 sps:$4 sm:$0xff]   ;;  %1893 = vmatprep.subr.bf16.mxu0 %v3424_v5  ;;  %v3429_v8 = vld [vmem:[%s4016_s11 + $0x2c0] ss:$16 sps:$4 sm:$0xff]   ;;  %v557_v43 = vunpack.c.0.s8 %v556_v38 }
  0x18   : > { %1934 = vmatprep.subr.bf16.mxu1 %v3426_v6  ;;  %v3430_v9 = vld [vmem:[%s4016_s11 + $0xa4] ss:$16 sps:$4 sm:$0xff]   ;;  %v3434_v11 = vld [vmem:[%s4016_s11 + $0xa0] ss:$16 sps:$4 sm:$0xff]  }
  0x19   : > { %v3432_v10 = vld [vmem:[%s4016_s11 + $0x2a4] ss:$16 sps:$4 sm:$0xff]   ;;  %v3435_v12 = vld [vmem:[%s4016_s11 + $0x2a0] ss:$16 sps:$4 sm:$0xff]   ;;  %v560_v50 = vsub.s32 %v557_v43, %v4058_v44 }
  0x1a   : > { %1894 = vmatpush1.bf16.msra.mxu0 %v3428_v7  ;;  %v3436_v13 = vld [vmem:[%s4016_s11 + $0x84] ss:$16 sps:$4 sm:$0xff]   ;;  %v3440_v15 = vld [vmem:[%s4016_s11 + $0x80] ss:$16 sps:$4 sm:$0xff]  }
  0x1b   : > { %1935 = vmatpush1.bf16.msra.mxu1 %v3429_v8  ;;  %1895 = vmatprep.subr.bf16.mxu0 %v3430_v9  ;;  %v3438_v14 = vld [vmem:[%s4016_s11 + $0x284] ss:$16 sps:$4 sm:$0xff]   ;;  %v3441_v16 = vld [vmem:[%s4016_s11 + $0x280] ss:$16 sps:$4 sm:$0xff]  }
  0x1c   : > { %1936 = vmatprep.subr.bf16.mxu1 %v3432_v10  ;;  %v3442_v17 = vld [vmem:[%s4016_s11 + $0x64] ss:$16 sps:$4 sm:$0xff]   ;;  %v3446_v19 = vld [vmem:[%s4016_s11 + $0x60] ss:$16 sps:$4 sm:$0xff]  }
  0x1d   : > { %v3444_v18 = vld [vmem:[%s4016_s11 + $0x264] ss:$16 sps:$4 sm:$0xff]   ;;  %v3447_v20 = vld [vmem:[%s4016_s11 + $0x260] ss:$16 sps:$4 sm:$0xff]  }
  0x1e   : > { %1896 = vmatpush1.bf16.msra.mxu0 %v3434_v11  ;;  %v3448_v21 = vld [vmem:[%s4016_s11 + $0x44] ss:$16 sps:$4 sm:$0xff]   ;;  %v3452_v23 = vld [vmem:[%s4016_s11 + $0x40] ss:$16 sps:$4 sm:$0xff]  }
  0x1f   : > { %1937 = vmatpush1.bf16.msra.mxu1 %v3435_v12  ;;  %1897 = vmatprep.subr.bf16.mxu0 %v3436_v13  ;;  %v3450_v22 = vld [vmem:[%s4016_s11 + $0x244] ss:$16 sps:$4 sm:$0xff]   ;;  %v3453_v24 = vld [vmem:[%s4016_s11 + $0x240] ss:$16 sps:$4 sm:$0xff]  }
  0x20   : > { %1938 = vmatprep.subr.bf16.mxu1 %v3438_v14  ;;  %v3454_v25 = vld [vmem:[%s4016_s11 + $0x24] ss:$16 sps:$4 sm:$0xff]   ;;  %v3458_v27 = vld [vmem:[%s4016_s11 + $0x20] ss:$16 sps:$4 sm:$0xff]  }
  0x21   : > { %v3456_v26 = vld [vmem:[%s4016_s11 + $0x224] ss:$16 sps:$4 sm:$0xff]   ;;  %v3459_v28 = vld [vmem:[%s4016_s11 + $0x220] ss:$16 sps:$4 sm:$0xff]  }
  0x22   : > { %1898 = vmatpush1.bf16.msra.mxu0 %v3440_v15  ;;  %v3460_v29 = vld [vmem:[%s4016_s11 + $0x4] ss:$16 sps:$4 sm:$0xff]   ;;  %v3464_v31 = vld [vmem:[%s4016_s11] ss:$16 sps:$4 sm:$0xff]  }
  0x23   : > { %1939 = vmatpush1.bf16.msra.mxu1 %v3441_v16  ;;  %1899 = vmatprep.subr.bf16.mxu0 %v3442_v17  ;;  %v3462_v30 = vld [vmem:[%s4016_s11 + $0x204] ss:$16 sps:$4 sm:$0xff]   ;;  %v3465_v32 = vld [vmem:[%s4016_s11 + $0x200] ss:$16 sps:$4 sm:$0xff]  }
  0x24   : > { %1940 = vmatprep.subr.bf16.mxu1 %v3444_v18  ;;  %v3466_v33 = vld [vmem:[%s4016_s11 + $0x1e4] ss:$16 sps:$4 sm:$0xff]   ;;  %v3470_v35 = vld [vmem:[%s4016_s11 + $0x1e0] ss:$16 sps:$4 sm:$0xff]  }
  0x25   : > { %v3468_v34 = vld [vmem:[%s4016_s11 + $0x3e4] ss:$16 sps:$4 sm:$0xff]   ;;  %v3471_v36 = vld [vmem:[%s4016_s11 + $0x3e0] ss:$16 sps:$4 sm:$0xff]  }
  0x26   : > { %1900 = vmatpush1.bf16.msra.mxu0 %v3446_v19  ;;  %v3472_v40 = vld [vmem:[%s4016_s11 + $0x1c4] ss:$16 sps:$4 sm:$0xff]   ;;  %v3476_v42 = vld [vmem:[%s4016_s11 + $0x1c0] ss:$16 sps:$4 sm:$0xff]  }
  0x27   : > { %1941 = vmatpush1.bf16.msra.mxu1 %v3447_v20  ;;  %1901 = vmatprep.subr.bf16.mxu0 %v3448_v21  ;;  %v3474_v41 = vld [vmem:[%s4016_s11 + $0x3c4] ss:$16 sps:$4 sm:$0xff]   ;;  %v3477_v45 = vld [vmem:[%s4016_s11 + $0x3c0] ss:$16 sps:$4 sm:$0xff]  }
  0x28   : > { %1942 = vmatprep.subr.bf16.mxu1 %v3450_v22  ;;  %v3478_v46 = vld [vmem:[%s4016_s11 + $0x1a4] ss:$16 sps:$4 sm:$0xff]   ;;  %v3482_v48 = vld [vmem:[%s4016_s11 + $0x1a0] ss:$16 sps:$4 sm:$0xff]  }
  0x29   : > { %v3480_v47 = vld [vmem:[%s4016_s11 + $0x3a4] ss:$16 sps:$4 sm:$0xff]   ;;  %v3483_v49 = vld [vmem:[%s4016_s11 + $0x3a0] ss:$16 sps:$4 sm:$0xff]  }
  0x2a   : > { %1902 = vmatpush1.bf16.msra.mxu0 %v3452_v23  ;;  %v3484_v51 = vld [vmem:[%s4016_s11 + $0x184] ss:$16 sps:$4 sm:$0xff]   ;;  %v3488_v54 = vld [vmem:[%s4016_s11 + $0x180] ss:$16 sps:$4 sm:$0xff]  }
  0x2b   : > { %1943 = vmatpush1.bf16.msra.mxu1 %v3453_v24  ;;  %1903 = vmatprep.subr.bf16.mxu0 %v3454_v25  ;;  %v3486_v52 = vld [vmem:[%s4016_s11 + $0x384] ss:$16 sps:$4 sm:$0xff]   ;;  %v3489_v57 = vld [vmem:[%s4016_s11 + $0x380] ss:$16 sps:$4 sm:$0xff]  }
  0x2c   : > { %1944 = vmatprep.subr.bf16.mxu1 %v3456_v26  ;;  %v296_v53 = vld [vmem:[%s280_s30] sm:$0xff] }
  0x2d   : > { %v561_v55 = vrot.slane %v296_v53, %v560_v50  ;;  %v554_v56 = vcombine.high %v296_v53, %v296_v53  ;;  %v3490_v58 = vld [vmem:[%s4016_s11 + $0x164] ss:$16 sps:$4 sm:$0xff]   ;;  %v3494_v62 = vld [vmem:[%s4016_s11 + $0x160] ss:$16 sps:$4 sm:$0xff]  }
  0x2e   : > { %1904 = vmatpush1.bf16.msra.mxu0 %v3458_v27  ;;  %v3492_v59 = vld [vmem:[%s4016_s11 + $0x364] ss:$16 sps:$4 sm:$0xff]   ;;  %v3495_v1 = vld [vmem:[%s4016_s11 + $0x360] ss:$16 sps:$4 sm:$0xff]  }
  0x2f   : > { %1945 = vmatpush1.bf16.msra.mxu1 %v3459_v28  ;;  %1905 = vmatprep.subr.bf16.mxu0 %v3460_v29  ;;  %v569_v60 = vcombine.high %v561_v55, %v561_v55  ;;  %v568_v61 = vrot.slane %v554_v56, %v560_v50  ;;  %v3496_v2 = vld [vmem:[%s4016_s11 + $0x144] ss:$16 sps:$4 sm:$0xff]   ;;  %v3500_v5 = vld [vmem:[%s4016_s11 + $0x140] ss:$16 sps:$4 sm:$0xff]   ;;  %v4100_v15 = vrot.slane %v561_v55, %v560_v50 }
  0x30   : > { %1946 = vmatprep.subr.bf16.mxu1 %v3462_v30  ;;  %v3498_v3 = vld [vmem:[%s4016_s11 + $0x344] ss:$16 sps:$4 sm:$0xff]   ;;  %v3501_v6 = vld [vmem:[%s4016_s11 + $0x340] ss:$16 sps:$4 sm:$0xff]  }
  0x31   : > { %v4078_v63 = vrot.slane %v569_v60, %v560_v50  ;;  %v4080_v0 = vrot.slane %v568_v61, %v560_v50  ;;  %v3502_v7 = vld [vmem:[%s4016_s11 + $0x124] ss:$16 sps:$4 sm:$0xff]   ;;  %v3506_v9 = vld [vmem:[%s4016_s11 + $0x120] ss:$16 sps:$4 sm:$0xff]   ;;  %v570_v13 = vcombine.high %v568_v61, %v568_v61  ;;  %v4109_v20 = vcombine.high %v4100_v15, %v4100_v15 }
  0x32   : > { %1906 = vmatpush1.bf16.msra.mxu0 %v3464_v31  ;;  %v3504_v8 = vld [vmem:[%s4016_s11 + $0x324] ss:$16 sps:$4 sm:$0xff]   ;;  %v3507_v10 = vld [vmem:[%s4016_s11 + $0x320] ss:$16 sps:$4 sm:$0xff]  }
  0x33   : > { %1947 = vmatpush1.bf16.msra.mxu1 %v3465_v32  ;;  %1907 = vmatprep.subr.bf16.mxu0 %v3466_v33  ;;  %v4087_v4 = vcombine.high %v4078_v63, %v4078_v63  ;;  %v3508_v11 = vld [vmem:[%s4016_s11 + $0x104] ss:$16 sps:$4 sm:$0xff]   ;;  %v3512_v14 = vld [vmem:[%s4016_s11 + $0x100] ss:$16 sps:$4 sm:$0xff]   ;;  %v4105_v19 = vrot.slane %v570_v13, %v560_v50 }
  0x34   : > { %1948 = vmatprep.subr.bf16.mxu1 %v3468_v34  ;;  %1923 = vmatprep.mubr.bf16.mxu0 %v4078_v63  ;;  %v3510_v12 = vld [vmem:[%s4016_s11 + $0x304] ss:$16 sps:$4 sm:$0xff]   ;;  %v3513_v16 = vld [vmem:[%s4016_s11 + $0x300] ss:$16 sps:$4 sm:$0xff]  }
  0x35   : > { %1964 = vmatprep.mubr.bf16.mxu1 %v4087_v4  ;;  %v3516_v17 = vld [vmem:[%s4016_s11 + $0x4e4] ss:$16 sps:$4 sm:$0xff]   ;;  %v3514_v21 = vld [vmem:[%s4016_s11 + $0x4e0] ss:$16 sps:$4 sm:$0xff]   ;;  %v4117_v25 = vcombine.high %v4105_v19, %v4105_v19 }
  0x36   : > { %1908 = vmatpush2.bf16.msra.mxu0 %v3470_v35  ;;  %v3519_v18 = vld [vmem:[%s4016_s11 + $0x6e4] ss:$16 sps:$4 sm:$0xff]   ;;  %v3517_v22 = vld [vmem:[%s4016_s11 + $0x6e0] ss:$16 sps:$4 sm:$0xff]  }
  0x37   : > { %1949 = vmatpush2.bf16.msra.mxu1 %v3471_v36  ;;  %1909 = vmatprep.subr.bf16.mxu0 %v3472_v40  ;;  %v3522_v23 = vld [vmem:[%s4016_s11 + $0x4c4] ss:$16 sps:$4 sm:$0xff]   ;;  %v3520_v26 = vld [vmem:[%s4016_s11 + $0x4c0] ss:$16 sps:$4 sm:$0xff]  }
  0x38   : > { %1950 = vmatprep.subr.bf16.mxu1 %v3474_v41  ;;  %v3525_v24 = vld [vmem:[%s4016_s11 + $0x6c4] ss:$16 sps:$4 sm:$0xff]   ;;  %v3523_v27 = vld [vmem:[%s4016_s11 + $0x6c0] ss:$16 sps:$4 sm:$0xff]  }
  0x39   : > { %v3528_v28 = vld [vmem:[%s4016_s11 + $0x4a4] ss:$16 sps:$4 sm:$0xff]   ;;  %v3526_v30 = vld [vmem:[%s4016_s11 + $0x4a0] ss:$16 sps:$4 sm:$0xff]  }
  0x3a   : > { %1910 = vmatpush2.bf16.msra.mxu0 %v3476_v42  ;;  %v3531_v29 = vld [vmem:[%s4016_s11 + $0x6a4] ss:$16 sps:$4 sm:$0xff]   ;;  %v3529_v31 = vld [vmem:[%s4016_s11 + $0x6a0] ss:$16 sps:$4 sm:$0xff]  }
  0x3b   : > { %1951 = vmatpush2.bf16.msra.mxu1 %v3477_v45  ;;  %1911 = vmatprep.subr.bf16.mxu0 %v3478_v46  ;;  %v3534_v32 = vld [vmem:[%s4016_s11 + $0x484] ss:$16 sps:$4 sm:$0xff]   ;;  %v3532_v34 = vld [vmem:[%s4016_s11 + $0x480] ss:$16 sps:$4 sm:$0xff]  }
  0x3c   : > { %1952 = vmatprep.subr.bf16.mxu1 %v3480_v47  ;;  %v3537_v33 = vld [vmem:[%s4016_s11 + $0x684] ss:$16 sps:$4 sm:$0xff]   ;;  %v3535_v35 = vld [vmem:[%s4016_s11 + $0x680] ss:$16 sps:$4 sm:$0xff]  }
  0x3d   : > { %v3540_v36 = vld [vmem:[%s4016_s11 + $0x464] ss:$16 sps:$4 sm:$0xff]   ;;  %v3538_v38 = vld [vmem:[%s4016_s11 + $0x460] ss:$16 sps:$4 sm:$0xff]  }
  0x3e   : > { %1912 = vmatpush2.bf16.msra.mxu0 %v3482_v48  ;;  %v3543_v37 = vld [vmem:[%s4016_s11 + $0x664] ss:$16 sps:$4 sm:$0xff]   ;;  %v3541_v39 = vld [vmem:[%s4016_s11 + $0x660] ss:$16 sps:$4 sm:$0xff]  }
  0x3f   : > { %1953 = vmatpush2.bf16.msra.mxu1 %v3483_v49  ;;  %1913 = vmatprep.subr.bf16.mxu0 %v3484_v51  ;;  %v3546_v40 = vld [vmem:[%s4016_s11 + $0x444] ss:$16 sps:$4 sm:$0xff]   ;;  %v3544_v42 = vld [vmem:[%s4016_s11 + $0x440] ss:$16 sps:$4 sm:$0xff]  }
  0x40   : > { %1954 = vmatprep.subr.bf16.mxu1 %v3486_v52  ;;  %v3549_v41 = vld [vmem:[%s4016_s11 + $0x644] ss:$16 sps:$4 sm:$0xff]   ;;  %v3547_v43 = vld [vmem:[%s4016_s11 + $0x640] ss:$16 sps:$4 sm:$0xff]  }
  0x41   : > { %v3552_v45 = vld [vmem:[%s4016_s11 + $0x424] ss:$16 sps:$4 sm:$0xff]   ;;  %v3550_v47 = vld [vmem:[%s4016_s11 + $0x420] ss:$16 sps:$4 sm:$0xff]  }
  0x42   : > { %1914 = vmatpush2.bf16.msra.mxu0 %v3488_v54  ;;  %v3555_v46 = vld [vmem:[%s4016_s11 + $0x624] ss:$16 sps:$4 sm:$0xff]   ;;  %v3553_v48 = vld [vmem:[%s4016_s11 + $0x620] ss:$16 sps:$4 sm:$0xff]  }
  0x43   : > { %1955 = vmatpush2.bf16.msra.mxu1 %v3489_v57  ;;  %1915 = vmatprep.subr.bf16.mxu0 %v3490_v58  ;;  %v3558_v49 = vld [vmem:[%s4016_s11 + $0x404] ss:$16 sps:$4 sm:$0xff]   ;;  %v3556_v51 = vld [vmem:[%s4016_s11 + $0x400] ss:$16 sps:$4 sm:$0xff]  }
  0x44   : > { %1956 = vmatprep.subr.bf16.mxu1 %v3492_v59  ;;  %v3561_v50 = vld [vmem:[%s4016_s11 + $0x604] ss:$16 sps:$4 sm:$0xff]   ;;  %v3559_v52 = vld [vmem:[%s4016_s11 + $0x600] ss:$16 sps:$4 sm:$0xff]  }
  0x45   : > { %v3564_v53 = vld [vmem:[%s4016_s11 + $0x5e4] ss:$16 sps:$4 sm:$0xff]   ;;  %v3562_v55 = vld [vmem:[%s4016_s11 + $0x5e0] ss:$16 sps:$4 sm:$0xff]  }
  0x46   : > { %1916 = vmatpush2.bf16.msra.mxu0 %v3494_v62  ;;  %v3567_v54 = vld [vmem:[%s4016_s11 + $0x7e4] ss:$16 sps:$4 sm:$0xff]   ;;  %v3565_v56 = vld [vmem:[%s4016_s11 + $0x7e0] ss:$16 sps:$4 sm:$0xff]  }
  0x47   : > { %1957 = vmatpush2.bf16.msra.mxu1 %v3495_v1  ;;  %1917 = vmatprep.subr.bf16.mxu0 %v3496_v2  ;;  %v3570_v57 = vld [vmem:[%s4016_s11 + $0x5c4] ss:$16 sps:$4 sm:$0xff]   ;;  %v3568_v59 = vld [vmem:[%s4016_s11 + $0x5c0] ss:$16 sps:$4 sm:$0xff]  }
  0x48   : > { %1958 = vmatprep.subr.bf16.mxu1 %v3498_v3  ;;  %v3573_v58 = vld [vmem:[%s4016_s11 + $0x7c4] ss:$16 sps:$4 sm:$0xff]   ;;  %v3571_v60 = vld [vmem:[%s4016_s11 + $0x7c0] ss:$16 sps:$4 sm:$0xff]  }
  0x49   : > { %v3576_v61 = vld [vmem:[%s4016_s11 + $0x5a4] ss:$16 sps:$4 sm:$0xff]   ;;  %v3574_v1 = vld [vmem:[%s4016_s11 + $0x5a0] ss:$16 sps:$4 sm:$0xff]  }
  0x4a   : > { %1918 = vmatpush2.bf16.msra.mxu0 %v3500_v5  ;;  %v3579_v62 = vld [vmem:[%s4016_s11 + $0x7a4] ss:$16 sps:$4 sm:$0xff]   ;;  %v3577_v2 = vld [vmem:[%s4016_s11 + $0x7a0] ss:$16 sps:$4 sm:$0xff]  }
  0x4b   : > { %1959 = vmatpush2.bf16.msra.mxu1 %v3501_v6  ;;  %1919 = vmatprep.subr.bf16.mxu0 %v3502_v7  ;;  %v3582_v3 = vld [vmem:[%s4016_s11 + $0x584] ss:$16 sps:$4 sm:$0xff]   ;;  %v3580_v6 = vld [vmem:[%s4016_s11 + $0x580] ss:$16 sps:$4 sm:$0xff]  }
  0x4c   : > { %1960 = vmatprep.subr.bf16.mxu1 %v3504_v8  ;;  %v3585_v5 = vld [vmem:[%s4016_s11 + $0x784] ss:$16 sps:$4 sm:$0xff]   ;;  %v3583_v7 = vld [vmem:[%s4016_s11 + $0x780] ss:$16 sps:$4 sm:$0xff]  }
  0x4d   : > { %v3588_v8 = vld [vmem:[%s4016_s11 + $0x564] ss:$16 sps:$4 sm:$0xff]  }
  0x4e   : > { %1920 = vmatpush2.bf16.msra.mxu0 %v3506_v9  ;;  %v3591_v9 = vld [vmem:[%s4016_s11 + $0x764] ss:$16 sps:$4 sm:$0xff]  }
  0x4f   : > { %1961 = vmatpush2.bf16.msra.mxu1 %v3507_v10  ;;  %1921 = vmatprep.subr.bf16.mxu0 %v3508_v11  ;;  %v3586_v10 = vld [vmem:[%s4016_s11 + $0x560] ss:$16 sps:$4 sm:$0xff]   ;;  %v3597_v13 = vld [vmem:[%s4016_s11 + $0x744] ss:$16 sps:$4 sm:$0xff]  }
  0x50   : > { %1962 = vmatprep.subr.bf16.mxu1 %v3510_v12  ;;  %v3589_v11 = vld [vmem:[%s4016_s11 + $0x760] ss:$16 sps:$4 sm:$0xff]   ;;  %v3594_v12 = vld [vmem:[%s4016_s11 + $0x544] ss:$16 sps:$4 sm:$0xff]  }
  0x52   : > { %1922 = vmatpush2.bf16.msra.mxu0 %v3512_v14  ;;  %v3592_v14 = vld [vmem:[%s4016_s11 + $0x540] ss:$16 sps:$4 sm:$0xff]  }
  0x53   : > { %1963 = vmatpush2.bf16.msra.mxu1 %v3513_v16  ;;  %1973 = vmatprep.subr.bf16.mxu0 %v3516_v17  ;;  %v3595_v16 = vld [vmem:[%s4016_s11 + $0x740] ss:$16 sps:$4 sm:$0xff]   ;;  %v3600_v17 = vld [vmem:[%s4016_s11 + $0x524] ss:$16 sps:$4 sm:$0xff]  }
  0x54   : > { %2014 = vmatprep.subr.bf16.mxu1 %v3519_v18  ;;  %v3603_v18 = vld [vmem:[%s4016_s11 + $0x724] ss:$16 sps:$4 sm:$0xff]  }
  0x55   : > { %1924 = vmatmul.mubr.bf16.vlgmr.msra.gmra.mxu0 %v4100_v15 }
  0x56   : > { %1965 = vmatmul.mubr.bf16.vlgmr.msra.gmra.mxu1 %v4109_v20  ;;  %1974 = vmatpush1.bf16.msra.mxu0 %v3514_v21  ;;  %v3598_v21 = vld [vmem:[%s4016_s11 + $0x520] ss:$16 sps:$4 sm:$0xff]  }
  0x57   : > { %2015 = vmatpush1.bf16.msra.mxu1 %v3517_v22  ;;  %1975 = vmatprep.subr.bf16.mxu0 %v3522_v23  ;;  %v3601_v22 = vld [vmem:[%s4016_s11 + $0x720] ss:$16 sps:$4 sm:$0xff]   ;;  %v3606_v23 = vld [vmem:[%s4016_s11 + $0x504] ss:$16 sps:$4 sm:$0xff]  }
  0x58   : > { %2016 = vmatprep.subr.bf16.mxu1 %v3525_v24  ;;  %2005 = vmatprep.mubr.bf16.mxu0 %v4105_v19  ;;  %v3609_v24 = vld [vmem:[%s4016_s11 + $0x704] ss:$16 sps:$4 sm:$0xff]  }
  0x59   : > { %2046 = vmatprep.mubr.bf16.mxu1 %v4117_v25 }
  0x5a   : > { %1976 = vmatpush1.bf16.msra.mxu0 %v3520_v26  ;;  %v3604_v26 = vld [vmem:[%s4016_s11 + $0x500] ss:$16 sps:$4 sm:$0xff]  }
  0x5b   : > { %2017 = vmatpush1.bf16.msra.mxu1 %v3523_v27  ;;  %1977 = vmatprep.subr.bf16.mxu0 %v3528_v28  ;;  %v3607_v27 = vld [vmem:[%s4016_s11 + $0x700] ss:$16 sps:$4 sm:$0xff]   ;;  %v3613_v28 = vld [vmem:[%s4016_s11 + $0xec] ss:$16 sps:$4 sm:$0xff]  }
  0x5c   : > { %2018 = vmatprep.subr.bf16.mxu1 %v3531_v29  ;;  %v3616_v29 = vld [vmem:[%s4016_s11 + $0x2ec] ss:$16 sps:$4 sm:$0xff]  }
  0x5e   : > { %1978 = vmatpush1.bf16.msra.mxu0 %v3526_v30  ;;  %v4185_v30 = vcombine.high %v4080_v0, %v4080_v0 }
  0x5f   : > { %2019 = vmatpush1.bf16.msra.mxu1 %v3529_v31  ;;  %1979 = vmatprep.subr.bf16.mxu0 %v3534_v32  ;;  %v3611_v31 = vld [vmem:[%s4016_s11 + $0xe8] ss:$16 sps:$4 sm:$0xff]  }
  0x60   : > { %2020 = vmatprep.subr.bf16.mxu1 %v3537_v33  ;;  %v3614_v32 = vld [vmem:[%s4016_s11 + $0x2e8] ss:$16 sps:$4 sm:$0xff]   ;;  %v3619_v33 = vld [vmem:[%s4016_s11 + $0xcc] ss:$16 sps:$4 sm:$0xff]  }
  0x62   : > { %1980 = vmatpush1.bf16.msra.mxu0 %v3532_v34  ;;  %v3622_v34 = vld [vmem:[%s4016_s11 + $0x2cc] ss:$16 sps:$4 sm:$0xff]  }
  0x63   : > { %2021 = vmatpush1.bf16.msra.mxu1 %v3535_v35  ;;  %1981 = vmatprep.subr.bf16.mxu0 %v3540_v36  ;;  %v3617_v35 = vld [vmem:[%s4016_s11 + $0xc8] ss:$16 sps:$4 sm:$0xff]  }
  0x64   : > { %2022 = vmatprep.subr.bf16.mxu1 %v3543_v37  ;;  %v3620_v36 = vld [vmem:[%s4016_s11 + $0x2c8] ss:$16 sps:$4 sm:$0xff]   ;;  %v3625_v37 = vld [vmem:[%s4016_s11 + $0xac] ss:$16 sps:$4 sm:$0xff]  }
  0x66   : > { %1982 = vmatpush1.bf16.msra.mxu0 %v3538_v38  ;;  %v3628_v38 = vld [vmem:[%s4016_s11 + $0x2ac] ss:$16 sps:$4 sm:$0xff]  }
  0x67   : > { %2023 = vmatpush1.bf16.msra.mxu1 %v3541_v39  ;;  %1983 = vmatprep.subr.bf16.mxu0 %v3546_v40  ;;  %v3623_v39 = vld [vmem:[%s4016_s11 + $0xa8] ss:$16 sps:$4 sm:$0xff]  }
  0x68   : > { %2024 = vmatprep.subr.bf16.mxu1 %v3549_v41  ;;  %v3626_v40 = vld [vmem:[%s4016_s11 + $0x2a8] ss:$16 sps:$4 sm:$0xff]   ;;  %v3631_v41 = vld [vmem:[%s4016_s11 + $0x8c] ss:$16 sps:$4 sm:$0xff]  }
  0x6a   : > { %1984 = vmatpush1.bf16.msra.mxu0 %v3544_v42  ;;  %v3634_v42 = vld [vmem:[%s4016_s11 + $0x28c] ss:$16 sps:$4 sm:$0xff]  }
  0x6b   : > { %2025 = vmatpush1.bf16.msra.mxu1 %v3547_v43  ;;  %1985 = vmatprep.subr.bf16.mxu0 %v3552_v45  ;;  %v3629_v43 = vld [vmem:[%s4016_s11 + $0x88] ss:$16 sps:$4 sm:$0xff]   ;;  %v3640_v45 = vld [vmem:[%s4016_s11 + $0x26c] ss:$16 sps:$4 sm:$0xff]  }
  0x6c   : > { %2026 = vmatprep.subr.bf16.mxu1 %v3555_v46  ;;  %v3635_v46 = vld [vmem:[%s4016_s11 + $0x68] ss:$16 sps:$4 sm:$0xff]  }
  0x6e   : > { %1986 = vmatpush1.bf16.msra.mxu0 %v3550_v47  ;;  %v3638_v47 = vld [vmem:[%s4016_s11 + $0x268] ss:$16 sps:$4 sm:$0xff]  }
  0x6f   : > { %2027 = vmatpush1.bf16.msra.mxu1 %v3553_v48  ;;  %1987 = vmatprep.subr.bf16.mxu0 %v3558_v49  ;;  %v3643_v48 = vld [vmem:[%s4016_s11 + $0x4c] ss:$16 sps:$4 sm:$0xff]  }
  0x70   : > { %2028 = vmatprep.subr.bf16.mxu1 %v3561_v50  ;;  %v3646_v49 = vld [vmem:[%s4016_s11 + $0x24c] ss:$16 sps:$4 sm:$0xff]   ;;  %v3641_v50 = vld [vmem:[%s4016_s11 + $0x48] ss:$16 sps:$4 sm:$0xff]  }
  0x72   : > { %1988 = vmatpush1.bf16.msra.mxu0 %v3556_v51  ;;  %v3644_v51 = vld [vmem:[%s4016_s11 + $0x248] ss:$16 sps:$4 sm:$0xff]  }
  0x73   : > { %2029 = vmatpush1.bf16.msra.mxu1 %v3559_v52  ;;  %1989 = vmatprep.subr.bf16.mxu0 %v3564_v53  ;;  %v3649_v52 = vld [vmem:[%s4016_s11 + $0x2c] ss:$16 sps:$4 sm:$0xff]  }
  0x74   : > { %2030 = vmatprep.subr.bf16.mxu1 %v3567_v54  ;;  %v3652_v53 = vld [vmem:[%s4016_s11 + $0x22c] ss:$16 sps:$4 sm:$0xff]   ;;  %v3647_v54 = vld [vmem:[%s4016_s11 + $0x28] ss:$16 sps:$4 sm:$0xff]  }
  0x76   : > { %1990 = vmatpush2.bf16.msra.mxu0 %v3562_v55  ;;  %v3650_v55 = vld [vmem:[%s4016_s11 + $0x228] ss:$16 sps:$4 sm:$0xff]  }
  0x77   : > { %2031 = vmatpush2.bf16.msra.mxu1 %v3565_v56  ;;  %1991 = vmatprep.subr.bf16.mxu0 %v3570_v57  ;;  %v3655_v56 = vld [vmem:[%s4016_s11 + $0xc] ss:$16 sps:$4 sm:$0xff]  }
  0x78   : > { %2032 = vmatprep.subr.bf16.mxu1 %v3573_v58  ;;  %v3658_v57 = vld [vmem:[%s4016_s11 + $0x20c] ss:$16 sps:$4 sm:$0xff]   ;;  %v3653_v58 = vld [vmem:[%s4016_s11 + $0x8] ss:$16 sps:$4 sm:$0xff]  }
  0x7a   : > { %1992 = vmatpush2.bf16.msra.mxu0 %v3568_v59  ;;  %v3656_v59 = vld [vmem:[%s4016_s11 + $0x208] ss:$16 sps:$4 sm:$0xff]  }
  0x7b   : > { %2033 = vmatpush2.bf16.msra.mxu1 %v3571_v60  ;;  %1993 = vmatprep.subr.bf16.mxu0 %v3576_v61  ;;  %v3661_v60 = vld [vmem:[%s4016_s11 + $0x1ec] ss:$16 sps:$4 sm:$0xff]  }
  0x7c   : > { %2034 = vmatprep.subr.bf16.mxu1 %v3579_v62  ;;  %v3664_v61 = vld [vmem:[%s4016_s11 + $0x3ec] ss:$16 sps:$4 sm:$0xff]   ;;  %v3659_v62 = vld [vmem:[%s4016_s11 + $0x1e8] ss:$16 sps:$4 sm:$0xff]  }
  0x7e   : > { %1994 = vmatpush2.bf16.msra.mxu0 %v3574_v1  ;;  %v3662_v1 = vld [vmem:[%s4016_s11 + $0x3e8] ss:$16 sps:$4 sm:$0xff]  }
  0x7f   : > { %2035 = vmatpush2.bf16.msra.mxu1 %v3577_v2  ;;  %1995 = vmatprep.subr.bf16.mxu0 %v3582_v3  ;;  %v3667_v2 = vld [vmem:[%s4016_s11 + $0x1cc] ss:$16 sps:$4 sm:$0xff]  }
  0x80   : > { %2036 = vmatprep.subr.bf16.mxu1 %v3585_v5  ;;  %v3670_v3 = vld [vmem:[%s4016_s11 + $0x3cc] ss:$16 sps:$4 sm:$0xff]   ;;  %v3665_v5 = vld [vmem:[%s4016_s11 + $0x1c8] ss:$16 sps:$4 sm:$0xff]  }
  0x82   : > { %1996 = vmatpush2.bf16.msra.mxu0 %v3580_v6  ;;  %v3668_v6 = vld [vmem:[%s4016_s11 + $0x3c8] ss:$16 sps:$4 sm:$0xff]  }
  0x83   : > { %2037 = vmatpush2.bf16.msra.mxu1 %v3583_v7  ;;  %1997 = vmatprep.subr.bf16.mxu0 %v3588_v8  ;;  %v3673_v7 = vld [vmem:[%s4016_s11 + $0x1ac] ss:$16 sps:$4 sm:$0xff]  }
  0x84   : > { %2038 = vmatprep.subr.bf16.mxu1 %v3591_v9  ;;  %v3676_v8 = vld [vmem:[%s4016_s11 + $0x3ac] ss:$16 sps:$4 sm:$0xff]   ;;  %v3671_v9 = vld [vmem:[%s4016_s11 + $0x1a8] ss:$16 sps:$4 sm:$0xff]  }
  0x86   : > { %1998 = vmatpush2.bf16.msra.mxu0 %v3586_v10  ;;  %v3674_v10 = vld [vmem:[%s4016_s11 + $0x3a8] ss:$16 sps:$4 sm:$0xff]  }
  0x87   : > { %2039 = vmatpush2.bf16.msra.mxu1 %v3589_v11  ;;  %1999 = vmatprep.subr.bf16.mxu0 %v3594_v12  ;;  %v3679_v11 = vld [vmem:[%s4016_s11 + $0x18c] ss:$16 sps:$4 sm:$0xff]  }
  0x88   : > { %2040 = vmatprep.subr.bf16.mxu1 %v3597_v13  ;;  %v3682_v12 = vld [vmem:[%s4016_s11 + $0x38c] ss:$16 sps:$4 sm:$0xff]   ;;  %v3677_v13 = vld [vmem:[%s4016_s11 + $0x188] ss:$16 sps:$4 sm:$0xff]  }
  0x8a   : > { %2000 = vmatpush2.bf16.msra.mxu0 %v3592_v14  ;;  %v3680_v14 = vld [vmem:[%s4016_s11 + $0x388] ss:$16 sps:$4 sm:$0xff]  }
  0x8b   : > { %2041 = vmatpush2.bf16.msra.mxu1 %v3595_v16  ;;  %2001 = vmatprep.subr.bf16.mxu0 %v3600_v17  ;;  %v3685_v16 = vld [vmem:[%s4016_s11 + $0x16c] ss:$16 sps:$4 sm:$0xff]  }
  0x8c   : > { %2042 = vmatprep.subr.bf16.mxu1 %v3603_v18  ;;  %v3688_v17 = vld [vmem:[%s4016_s11 + $0x36c] ss:$16 sps:$4 sm:$0xff]   ;;  %v3683_v18 = vld [vmem:[%s4016_s11 + $0x168] ss:$16 sps:$4 sm:$0xff]  }
  0x8e   : > { %2002 = vmatpush2.bf16.msra.mxu0 %v3598_v21  ;;  %v3686_v21 = vld [vmem:[%s4016_s11 + $0x368] ss:$16 sps:$4 sm:$0xff]  }
  0x8f   : > { %2043 = vmatpush2.bf16.msra.mxu1 %v3601_v22  ;;  %2003 = vmatprep.subr.bf16.mxu0 %v3606_v23  ;;  %v3691_v22 = vld [vmem:[%s4016_s11 + $0x14c] ss:$16 sps:$4 sm:$0xff]  }
  0x90   : > { %2044 = vmatprep.subr.bf16.mxu1 %v3609_v24  ;;  %v3694_v23 = vld [vmem:[%s4016_s11 + $0x34c] ss:$16 sps:$4 sm:$0xff]   ;;  %v3689_v24 = vld [vmem:[%s4016_s11 + $0x148] ss:$16 sps:$4 sm:$0xff]  }
  0x92   : > { %2004 = vmatpush2.bf16.msra.mxu0 %v3604_v26  ;;  %v3692_v26 = vld [vmem:[%s4016_s11 + $0x348] ss:$16 sps:$4 sm:$0xff]  }
  0x93   : > { %2045 = vmatpush2.bf16.msra.mxu1 %v3607_v27  ;;  %2055 = vmatprep.subr.bf16.mxu0 %v3613_v28  ;;  %v3697_v27 = vld [vmem:[%s4016_s11 + $0x12c] ss:$16 sps:$4 sm:$0xff]  }
  0x94   : > { %2096 = vmatprep.subr.bf16.mxu1 %v3616_v29  ;;  %v3700_v28 = vld [vmem:[%s4016_s11 + $0x32c] ss:$16 sps:$4 sm:$0xff]   ;;  %v3695_v29 = vld [vmem:[%s4016_s11 + $0x128] ss:$16 sps:$4 sm:$0xff]  }
  0x95   : > { %2006 = vmatmul.mubr.bf16.vlgmr.msra.gmra.mxu0 %v4080_v0 }
  0x96   : > { %2047 = vmatmul.mubr.bf16.vlgmr.msra.gmra.mxu1 %v4185_v30  ;;  %2056 = vmatpush1.bf16.msra.mxu0 %v3611_v31  ;;  %v3698_v31 = vld [vmem:[%s4016_s11 + $0x328] ss:$16 sps:$4 sm:$0xff]  }
  0x97   : > { %2097 = vmatpush1.bf16.msra.mxu1 %v3614_v32  ;;  %2057 = vmatprep.subr.bf16.mxu0 %v3619_v33  ;;  %v3703_v32 = vld [vmem:[%s4016_s11 + $0x10c] ss:$16 sps:$4 sm:$0xff]  }
  0x98   : > { %2098 = vmatprep.subr.bf16.mxu1 %v3622_v34  ;;  %2087 = vmatprep.mubr.bf16.mxu0 %v4078_v63  ;;  %v3632_v63 = vld [vmem:[%s4016_s11 + $0x288] ss:$16 sps:$4 sm:$0xff]   ;;  %v3706_v33 = vld [vmem:[%s4016_s11 + $0x30c] ss:$16 sps:$4 sm:$0xff]  }
  0x99   : > { %2128 = vmatprep.mubr.bf16.mxu1 %v4087_v4  ;;  %v3637_v4 = vld [vmem:[%s4016_s11 + $0x6c] ss:$16 sps:$4 sm:$0xff]   ;;  %v3701_v34 = vld [vmem:[%s4016_s11 + $0x108] ss:$16 sps:$4 sm:$0xff]  }
  0x9a   : > { %2058 = vmatpush1.bf16.msra.mxu0 %v3617_v35  ;;  %v3704_v35 = vld [vmem:[%s4016_s11 + $0x308] ss:$16 sps:$4 sm:$0xff]  }
  0x9b   : > { %2099 = vmatpush1.bf16.msra.mxu1 %v3620_v36  ;;  %2059 = vmatprep.subr.bf16.mxu0 %v3625_v37  ;;  %v3709_v36 = vld [vmem:[%s4016_s11 + $0x4ec] ss:$16 sps:$4 sm:$0xff]  }
  0x9c   : > { %2100 = vmatprep.subr.bf16.mxu1 %v3628_v38  ;;  %v3712_v37 = vld [vmem:[%s4016_s11 + $0x6ec] ss:$16 sps:$4 sm:$0xff]   ;;  %v3707_v38 = vld [vmem:[%s4016_s11 + $0x4e8] ss:$16 sps:$4 sm:$0xff]  }
  0x9e   : > { %2060 = vmatpush1.bf16.msra.mxu0 %v3623_v39  ;;  %v3710_v39 = vld [vmem:[%s4016_s11 + $0x6e8] ss:$16 sps:$4 sm:$0xff]  }
  0x9f   : > { %2101 = vmatpush1.bf16.msra.mxu1 %v3626_v40  ;;  %2061 = vmatprep.subr.bf16.mxu0 %v3631_v41  ;;  %v3715_v40 = vld [vmem:[%s4016_s11 + $0x4cc] ss:$16 sps:$4 sm:$0xff]  }
  0xa0   : > { %2102 = vmatprep.subr.bf16.mxu1 %v3634_v42  ;;  %v3718_v41 = vld [vmem:[%s4016_s11 + $0x6cc] ss:$16 sps:$4 sm:$0xff]   ;;  %v3713_v42 = vld [vmem:[%s4016_s11 + $0x4c8] ss:$16 sps:$4 sm:$0xff]  }
  0xa2   : > { %2062 = vmatpush1.bf16.msra.mxu0 %v3629_v43  ;;  %v3716_v43 = vld [vmem:[%s4016_s11 + $0x6c8] ss:$16 sps:$4 sm:$0xff]  }
  0xa3   : > { %2103 = vmatpush1.bf16.msra.mxu1 %v3632_v63  ;;  %2063 = vmatprep.subr.bf16.mxu0 %v3637_v4  ;;  %v3721_v63 = vld [vmem:[%s4016_s11 + $0x4ac] ss:$16 sps:$4 sm:$0xff]  }
  0xa4   : > { %2104 = vmatprep.subr.bf16.mxu1 %v3640_v45  ;;  %v3724_v4 = vld [vmem:[%s4016_s11 + $0x6ac] ss:$16 sps:$4 sm:$0xff]  }
  0xa5   : > { %v3727_v45 = vld [vmem:[%s4016_s11 + $0x48c] ss:$16 sps:$4 sm:$0xff]  }
  0xa6   : > { %2064 = vmatpush1.bf16.msra.mxu0 %v3635_v46  ;;  %v3730_v46 = vld [vmem:[%s4016_s11 + $0x68c] ss:$16 sps:$4 sm:$0xff]  }
  0xa7   : > { %2105 = vmatpush1.bf16.msra.mxu1 %v3638_v47  ;;  %2065 = vmatprep.subr.bf16.mxu0 %v3643_v48  ;;  %v3725_v47 = vld [vmem:[%s4016_s11 + $0x488] ss:$16 sps:$4 sm:$0xff]   ;;  %v3736_v48 = vld [vmem:[%s4016_s11 + $0x66c] ss:$16 sps:$4 sm:$0xff]  }
  0xa8   : > { %2106 = vmatprep.subr.bf16.mxu1 %v3646_v49  ;;  %v3731_v49 = vld [vmem:[%s4016_s11 + $0x468] ss:$16 sps:$4 sm:$0xff]  }
  0xaa   : > { %2066 = vmatpush1.bf16.msra.mxu0 %v3641_v50  ;;  %v3734_v50 = vld [vmem:[%s4016_s11 + $0x668] ss:$16 sps:$4 sm:$0xff]  }
  0xab   : > { %2107 = vmatpush1.bf16.msra.mxu1 %v3644_v51  ;;  %2067 = vmatprep.subr.bf16.mxu0 %v3649_v52  ;;  %v3739_v51 = vld [vmem:[%s4016_s11 + $0x44c] ss:$16 sps:$4 sm:$0xff]  }
  0xac   : > { %2108 = vmatprep.subr.bf16.mxu1 %v3652_v53  ;;  %v3742_v52 = vld [vmem:[%s4016_s11 + $0x64c] ss:$16 sps:$4 sm:$0xff]   ;;  %v3737_v53 = vld [vmem:[%s4016_s11 + $0x448] ss:$16 sps:$4 sm:$0xff]  }
  0xae   : > { %2068 = vmatpush1.bf16.msra.mxu0 %v3647_v54  ;;  %v3740_v54 = vld [vmem:[%s4016_s11 + $0x648] ss:$16 sps:$4 sm:$0xff]  }
  0xaf   : > { %2109 = vmatpush1.bf16.msra.mxu1 %v3650_v55  ;;  %2069 = vmatprep.subr.bf16.mxu0 %v3655_v56  ;;  %v3745_v55 = vld [vmem:[%s4016_s11 + $0x42c] ss:$16 sps:$4 sm:$0xff]  }
  0xb0   : > { %2110 = vmatprep.subr.bf16.mxu1 %v3658_v57  ;;  %v3748_v56 = vld [vmem:[%s4016_s11 + $0x62c] ss:$16 sps:$4 sm:$0xff]   ;;  %v3743_v57 = vld [vmem:[%s4016_s11 + $0x428] ss:$16 sps:$4 sm:$0xff]  }
  0xb2   : > { %2070 = vmatpush1.bf16.msra.mxu0 %v3653_v58  ;;  %v3746_v58 = vld [vmem:[%s4016_s11 + $0x628] ss:$16 sps:$4 sm:$0xff]  }
  0xb3   : > { %2111 = vmatpush1.bf16.msra.mxu1 %v3656_v59  ;;  %2071 = vmatprep.subr.bf16.mxu0 %v3661_v60  ;;  %v3751_v59 = vld [vmem:[%s4016_s11 + $0x40c] ss:$16 sps:$4 sm:$0xff]  }
  0xb4   : > { %2112 = vmatprep.subr.bf16.mxu1 %v3664_v61  ;;  %v3754_v60 = vld [vmem:[%s4016_s11 + $0x60c] ss:$16 sps:$4 sm:$0xff]   ;;  %v3749_v61 = vld [vmem:[%s4016_s11 + $0x408] ss:$16 sps:$4 sm:$0xff]  }
  0xb6   : > { %2072 = vmatpush2.bf16.msra.mxu0 %v3659_v62  ;;  %v3752_v62 = vld [vmem:[%s4016_s11 + $0x608] ss:$16 sps:$4 sm:$0xff]  }
  0xb7   : > { %2113 = vmatpush2.bf16.msra.mxu1 %v3662_v1  ;;  %2073 = vmatprep.subr.bf16.mxu0 %v3667_v2  ;;  %v3757_v1 = vld [vmem:[%s4016_s11 + $0x5ec] ss:$16 sps:$4 sm:$0xff]  }
  0xb8   : > { %2114 = vmatprep.subr.bf16.mxu1 %v3670_v3  ;;  %v3760_v2 = vld [vmem:[%s4016_s11 + $0x7ec] ss:$16 sps:$4 sm:$0xff]   ;;  %v3755_v3 = vld [vmem:[%s4016_s11 + $0x5e8] ss:$16 sps:$4 sm:$0xff]  }
  0xba   : > { %2074 = vmatpush2.bf16.msra.mxu0 %v3665_v5  ;;  %v3758_v5 = vld [vmem:[%s4016_s11 + $0x7e8] ss:$16 sps:$4 sm:$0xff]  }
  0xbb   : > { %2115 = vmatpush2.bf16.msra.mxu1 %v3668_v6  ;;  %2075 = vmatprep.subr.bf16.mxu0 %v3673_v7  ;;  %v3763_v6 = vld [vmem:[%s4016_s11 + $0x5cc] ss:$16 sps:$4 sm:$0xff]  }
  0xbc   : > { %2116 = vmatprep.subr.bf16.mxu1 %v3676_v8  ;;  %v3766_v7 = vld [vmem:[%s4016_s11 + $0x7cc] ss:$16 sps:$4 sm:$0xff]   ;;  %v3761_v8 = vld [vmem:[%s4016_s11 + $0x5c8] ss:$16 sps:$4 sm:$0xff]  }
  0xbe   : > { %2076 = vmatpush2.bf16.msra.mxu0 %v3671_v9  ;;  %v3764_v9 = vld [vmem:[%s4016_s11 + $0x7c8] ss:$16 sps:$4 sm:$0xff]  }
  0xbf   : > { %2117 = vmatpush2.bf16.msra.mxu1 %v3674_v10  ;;  %2077 = vmatprep.subr.bf16.mxu0 %v3679_v11  ;;  %v3769_v10 = vld [vmem:[%s4016_s11 + $0x5ac] ss:$16 sps:$4 sm:$0xff]  }
  0xc0   : > { %2118 = vmatprep.subr.bf16.mxu1 %v3682_v12  ;;  %v3772_v11 = vld [vmem:[%s4016_s11 + $0x7ac] ss:$16 sps:$4 sm:$0xff]   ;;  %v3767_v12 = vld [vmem:[%s4016_s11 + $0x5a8] ss:$16 sps:$4 sm:$0xff]  }
  0xc2   : > { %2078 = vmatpush2.bf16.msra.mxu0 %v3677_v13  ;;  %v3770_v13 = vld [vmem:[%s4016_s11 + $0x7a8] ss:$16 sps:$4 sm:$0xff]  }
  0xc3   : > { %2119 = vmatpush2.bf16.msra.mxu1 %v3680_v14  ;;  %2079 = vmatprep.subr.bf16.mxu0 %v3685_v16  ;;  %v3775_v14 = vld [vmem:[%s4016_s11 + $0x58c] ss:$16 sps:$4 sm:$0xff]  }
  0xc4   : > { %2120 = vmatprep.subr.bf16.mxu1 %v3688_v17  ;;  %v3778_v16 = vld [vmem:[%s4016_s11 + $0x78c] ss:$16 sps:$4 sm:$0xff]   ;;  %v3773_v17 = vld [vmem:[%s4016_s11 + $0x588] ss:$16 sps:$4 sm:$0xff]  }
  0xc6   : > { %2080 = vmatpush2.bf16.msra.mxu0 %v3683_v18  ;;  %v3776_v18 = vld [vmem:[%s4016_s11 + $0x788] ss:$16 sps:$4 sm:$0xff]  }
  0xc7   : > { %2121 = vmatpush2.bf16.msra.mxu1 %v3686_v21  ;;  %2081 = vmatprep.subr.bf16.mxu0 %v3691_v22  ;;  %v3781_v21 = vld [vmem:[%s4016_s11 + $0x56c] ss:$16 sps:$4 sm:$0xff]  }
  0xc8   : > { %2122 = vmatprep.subr.bf16.mxu1 %v3694_v23  ;;  %v3784_v22 = vld [vmem:[%s4016_s11 + $0x76c] ss:$16 sps:$4 sm:$0xff]   ;;  %v3779_v23 = vld [vmem:[%s4016_s11 + $0x568] ss:$16 sps:$4 sm:$0xff]  }
  0xca   : > { %2082 = vmatpush2.bf16.msra.mxu0 %v3689_v24  ;;  %v3782_v24 = vld [vmem:[%s4016_s11 + $0x768] ss:$16 sps:$4 sm:$0xff]  }
  0xcb   : > { %2123 = vmatpush2.bf16.msra.mxu1 %v3692_v26  ;;  %2083 = vmatprep.subr.bf16.mxu0 %v3697_v27  ;;  %v3787_v26 = vld [vmem:[%s4016_s11 + $0x54c] ss:$16 sps:$4 sm:$0xff]  }
  0xcc   : > { %2124 = vmatprep.subr.bf16.mxu1 %v3700_v28  ;;  %v3790_v27 = vld [vmem:[%s4016_s11 + $0x74c] ss:$16 sps:$4 sm:$0xff]   ;;  %v3785_v28 = vld [vmem:[%s4016_s11 + $0x548] ss:$16 sps:$4 sm:$0xff]  }
  0xce   : > { %2084 = vmatpush2.bf16.msra.mxu0 %v3695_v29  ;;  %v3788_v29 = vld [vmem:[%s4016_s11 + $0x748] ss:$16 sps:$4 sm:$0xff]  }
  0xcf   : > { %2125 = vmatpush2.bf16.msra.mxu1 %v3698_v31  ;;  %2085 = vmatprep.subr.bf16.mxu0 %v3703_v32  ;;  %v3793_v31 = vld [vmem:[%s4016_s11 + $0x52c] ss:$16 sps:$4 sm:$0xff]  }
  0xd0   : > { %2126 = vmatprep.subr.bf16.mxu1 %v3706_v33  ;;  %v3796_v32 = vld [vmem:[%s4016_s11 + $0x72c] ss:$16 sps:$4 sm:$0xff]   ;;  %v3791_v33 = vld [vmem:[%s4016_s11 + $0x528] ss:$16 sps:$4 sm:$0xff]  }
  0xd2   : > { %2086 = vmatpush2.bf16.msra.mxu0 %v3701_v34  ;;  %v3794_v34 = vld [vmem:[%s4016_s11 + $0x728] ss:$16 sps:$4 sm:$0xff]  }
  0xd3   : > { %2127 = vmatpush2.bf16.msra.mxu1 %v3704_v35  ;;  %2137 = vmatprep.subr.bf16.mxu0 %v3709_v36  ;;  %v3799_v35 = vld [vmem:[%s4016_s11 + $0x50c] ss:$16 sps:$4 sm:$0xff]  }
  0xd4   : > { %2178 = vmatprep.subr.bf16.mxu1 %v3712_v37  ;;  %v3802_v36 = vld [vmem:[%s4016_s11 + $0x70c] ss:$16 sps:$4 sm:$0xff]   ;;  %v3797_v37 = vld [vmem:[%s4016_s11 + $0x508] ss:$16 sps:$4 sm:$0xff]  }
  0xd5   : > { %2088 = vmatmul.mubr.bf16.vlgmr.msra.gmra.mxu0 %v4100_v15  ;;  %v3719_v15 = vld [vmem:[%s4016_s11 + $0x4a8] ss:$16 sps:$4 sm:$0xff]  }
  0xd6   : > { %2129 = vmatmul.mubr.bf16.vlgmr.msra.gmra.mxu1 %v4109_v20  ;;  %2138 = vmatpush1.bf16.msra.mxu0 %v3707_v38  ;;  %v3722_v20 = vld [vmem:[%s4016_s11 + $0x6a8] ss:$16 sps:$4 sm:$0xff]  }
  0xd7   : > { %2179 = vmatpush1.bf16.msra.mxu1 %v3710_v39  ;;  %2139 = vmatprep.subr.bf16.mxu0 %v3715_v40  ;;  %v3800_v38 = vld [vmem:[%s4016_s11 + $0x708] ss:$16 sps:$4 sm:$0xff]  }
  0xd8   : > { %2180 = vmatprep.subr.bf16.mxu1 %v3718_v41  ;;  %2169 = vmatprep.mubr.bf16.mxu0 %v4105_v19  ;;  %v3728_v19 = vld [vmem:[%s4016_s11 + $0x688] ss:$16 sps:$4 sm:$0xff]  }
  0xd9   : > { %2210 = vmatprep.mubr.bf16.mxu1 %v4117_v25  ;;  %v3733_v25 = vld [vmem:[%s4016_s11 + $0x46c] ss:$16 sps:$4 sm:$0xff]  }
  0xda   : > { %2140 = vmatpush1.bf16.msra.mxu0 %v3713_v42 }
  0xdb   : > { %2181 = vmatpush1.bf16.msra.mxu1 %v3716_v43  ;;  %2141 = vmatprep.subr.bf16.mxu0 %v3721_v63 }
  0xdc   : > { %2182 = vmatprep.subr.bf16.mxu1 %v3724_v4 }
  0xde   : > { %2142 = vmatpush1.bf16.msra.mxu0 %v3719_v15 }
  0xdf   : > { %2183 = vmatpush1.bf16.msra.mxu1 %v3722_v20  ;;  %2143 = vmatprep.subr.bf16.mxu0 %v3727_v45 }
  0xe0   : > { %2184 = vmatprep.subr.bf16.mxu1 %v3730_v46 }
  0xe2   : > { %2144 = vmatpush1.bf16.msra.mxu0 %v3725_v47 }
  0xe3   : > { %2185 = vmatpush1.bf16.msra.mxu1 %v3728_v19  ;;  %2145 = vmatprep.subr.bf16.mxu0 %v3733_v25 }
  0xe4   : > { %2186 = vmatprep.subr.bf16.mxu1 %v3736_v48 }
  0xe6   : > { %2146 = vmatpush1.bf16.msra.mxu0 %v3731_v49 }
  0xe7   : > { %2187 = vmatpush1.bf16.msra.mxu1 %v3734_v50  ;;  %2147 = vmatprep.subr.bf16.mxu0 %v3739_v51 }
  0xe8   : > { %2188 = vmatprep.subr.bf16.mxu1 %v3742_v52 }
  0xea   : > { %2148 = vmatpush1.bf16.msra.mxu0 %v3737_v53 }
  0xeb   : > { %2189 = vmatpush1.bf16.msra.mxu1 %v3740_v54  ;;  %2149 = vmatprep.subr.bf16.mxu0 %v3745_v55 }
  0xec   : > { %2190 = vmatprep.subr.bf16.mxu1 %v3748_v56 }
  0xee   : > { %2150 = vmatpush1.bf16.msra.mxu0 %v3743_v57 }
  0xef   : > { %2191 = vmatpush1.bf16.msra.mxu1 %v3746_v58  ;;  %2151 = vmatprep.subr.bf16.mxu0 %v3751_v59 }
  0xf0   : > { %2192 = vmatprep.subr.bf16.mxu1 %v3754_v60 }
  0xf2   : > { %2152 = vmatpush1.bf16.msra.mxu0 %v3749_v61 }
  0xf3   : > { %2193 = vmatpush1.bf16.msra.mxu1 %v3752_v62  ;;  %2153 = vmatprep.subr.bf16.mxu0 %v3757_v1 }
  0xf4   : > { %2194 = vmatprep.subr.bf16.mxu1 %v3760_v2  ;;  %v3953_v2 = vmov 1983009808  }
  0xf6   : > { %2154 = vmatpush2.bf16.msra.mxu0 %v3755_v3  ;;  %v2226_v3 = vunpack.c.l.s4 %v3953_v2 }
  0xf7   : > { %2195 = vmatpush2.bf16.msra.mxu1 %v3758_v5  ;;  %2155 = vmatprep.subr.bf16.mxu0 %v3763_v6 }
  0xf8   : > { %2196 = vmatprep.subr.bf16.mxu1 %v3766_v7  ;;  %v2227_v7 = vunpack.c.0.s8 %v2226_v3 }
  0xfa   : > { %2156 = vmatpush2.bf16.msra.mxu0 %v3761_v8 }
  0xfb   : > { %2197 = vmatpush2.bf16.msra.mxu1 %v3764_v9  ;;  %2157 = vmatprep.subr.bf16.mxu0 %v3769_v10 }
  0xfc   : > { %2198 = vmatprep.subr.bf16.mxu1 %v3772_v11 }
  0xfe   : > { %2158 = vmatpush2.bf16.msra.mxu0 %v3767_v12 }
  0xff   : > { %2199 = vmatpush2.bf16.msra.mxu1 %v3770_v13  ;;  %2159 = vmatprep.subr.bf16.mxu0 %v3775_v14 }
 0x100   : > { %2200 = vmatprep.subr.bf16.mxu1 %v3778_v16  ;;  %v4324_v16 = vsub.s32 %v2227_v7, %v4058_v44 }
 0x102   : > { %2160 = vmatpush2.bf16.msra.mxu0 %v3773_v17 }
 0x103   : > { %2201 = vmatpush2.bf16.msra.mxu1 %v3776_v18  ;;  %2161 = vmatprep.subr.bf16.mxu0 %v3781_v21 }
 0x104   : > { %2202 = vmatprep.subr.bf16.mxu1 %v3784_v22 }
 0x106   : > { %2162 = vmatpush2.bf16.msra.mxu0 %v3779_v23 }
 0x107   : > { %2203 = vmatpush2.bf16.msra.mxu1 %v3782_v24  ;;  %2163 = vmatprep.subr.bf16.mxu0 %v3787_v26 }
 0x108   : > { %2204 = vmatprep.subr.bf16.mxu1 %v3790_v27  ;;  %v295_v27 = vld [vmem:[#allocation2] sm:$0xff] }
 0x10a   : > { %2164 = vmatpush2.bf16.msra.mxu0 %v3785_v28 }
 0x10b   : > { %2205 = vmatpush2.bf16.msra.mxu1 %v3788_v29  ;;  %2165 = vmatprep.subr.bf16.mxu0 %v3793_v31 }
 0x10c   : > { %2206 = vmatprep.subr.bf16.mxu1 %v3796_v32 }
 0x10e   : > { %2166 = vmatpush2.bf16.msra.mxu0 %v3791_v33 }
 0x10f   : > { %2207 = vmatpush2.bf16.msra.mxu1 %v3794_v34  ;;  %2167 = vmatprep.subr.bf16.mxu0 %v3799_v35 }
 0x110   : > { %2208 = vmatprep.subr.bf16.mxu1 %v3802_v36 }
 0x112   : > { %2168 = vmatpush2.bf16.msra.mxu0 %v3797_v37 }
 0x113   : > { %2209 = vmatpush2.bf16.msra.mxu1 %v3800_v38 }
 0x115   : > { %v1925_v39 = vpop.f32.mrf.mxu0  ;;  %2170 = vmatmul.mubr.bf16.vlgmr.msra.gmra.mxu0 %v4080_v0 }
 0x116   : > { %v1966_v40 = vpop.f32.mrf.mxu1  ;;  %2211 = vmatmul.mubr.bf16.vlgmr.msra.gmra.mxu1 %v4185_v30 }
 0x117   : > { %v1967_v41 = vadd.f32 %v1966_v40, %v1925_v39  ;;  %v1927_v42 = vpop.f32.mrf.mxu0 }
 0x118   : > { %v1968_v43 = vpop.f32.mrf.mxu1 }
 0x119   : > { %v1969_v63 = vadd.f32 %v1968_v43, %v1927_v42  ;;  %v1929_v4 = vpop.f32.mrf.mxu0 }
 0x11a   : > { %v1970_v15 = vpop.f32.mrf.mxu1 }
 0x11b   : > { %v1930_v20 = vpop.f32.mrf.mxu0 }
 0x11c   : > { %v1971_v45 = vpop.f32.mrf.mxu1 }
 0x155   : > { %v2007_v46 = vpop.f32.mrf.mxu0 }
 0x156   : > { %v2048_v47 = vpop.f32.mrf.mxu1  ;;  %v2008_v19 = vadd.f32 %v2007_v46, %v1967_v41 }
 0x157   : > { %v2009_v25 = vpop.f32.mrf.mxu0 }
 0x158   : > { %v2050_v48 = vpop.f32.mrf.mxu1  ;;  %v2049_v49 = vadd.f32 %v2048_v47, %v2008_v19  ;;  %v2010_v50 = vadd.f32 %v2009_v25, %v1969_v63 }
 0x159   : > { %v2011_v51 = vpop.f32.mrf.mxu0 }
 0x15a   : > { %v2052_v52 = vpop.f32.mrf.mxu1  ;;  %v2051_v0 = vadd.f32 %v2050_v48, %v2010_v50 }
 0x15b   : > { %v2012_v53 = vpop.f32.mrf.mxu0 }
 0x15c   : > { %v2053_v30 = vpop.f32.mrf.mxu1  ;;  %v2223_v54 = vcombine.low %v2049_v49, %v2051_v0 }
 0x15e   : > { %v2231_v24 = vrot.slane %v2223_v54, %v4324_v16 }
 0x195   : > { %v2089_v55 = vpop.f32.mrf.mxu0 }
 0x196   : > { %v2130_v56 = vpop.f32.mrf.mxu1 }
 0x197   : > { %v2131_v57 = vadd.f32 %v2130_v56, %v2089_v55  ;;  %v2091_v58 = vpop.f32.mrf.mxu0 }
 0x198   : > { %v2132_v59 = vpop.f32.mrf.mxu1 }
 0x199   : > { %v2093_v60 = vpop.f32.mrf.mxu0  ;;  %v2133_v8 = vadd.f32 %v2132_v59, %v2091_v58 }
 0x19a   : > { %v2134_v61 = vpop.f32.mrf.mxu1 }
 0x19b   : > { %v2094_v62 = vpop.f32.mrf.mxu0 }
 0x19c   : > { %v2135_v1 = vpop.f32.mrf.mxu1 }
 0x1d5   : > { %v2171_v5 = vpop.f32.mrf.mxu0 }
 0x1d6   : > { %v2212_v6 = vpop.f32.mrf.mxu1  ;;  %v2172_v9 = vadd.f32 %v2171_v5, %v2131_v57 }
 0x1d7   : > { %v2173_v10 = vpop.f32.mrf.mxu0 }
 0x1d8   : > { %v2214_v11 = vpop.f32.mrf.mxu1  ;;  %v2174_v12 = vadd.f32 %v2173_v10, %v2133_v8  ;;  %v2213_v17 = vadd.f32 %v2212_v6, %v2172_v9 }
 0x1d9   : > { %v2175_v13 = vpop.f32.mrf.mxu0 }
 0x1da   : > { %v2216_v14 = vpop.f32.mrf.mxu1  ;;  %v2215_v18 = vadd.f32 %v2214_v11, %v2174_v12 }
 0x1db   : > { %v2176_v21 = vpop.f32.mrf.mxu0 }
 0x1dc   : > { %v2217_v22 = vpop.f32.mrf.mxu1  ;;  %v2224_v23 = vcombine.low %v2213_v17, %v2215_v18 }
 0x1de   : > { %v2238_v26 = vrot.slane %v2224_v23, %v4324_v16 }
 0x1e0   : > { %v2239_v28 = vcombine.low %v2231_v24, %v2238_v26  ;;  %2246 = sbr.rel (%p3291_p6) target bundleno = 954 (0x3ba), region = 56 }
 0x1e2   : > { %v2241_v29 = vadd.f32 %v2239_v28, %v295_v27 }
 0x1e4   : > { %2242 = vst [vmem:[#allocation2] sm:$0xff] %v2241_v29 }
 0x1e5   : > { %v3803_v31 = vld [vmem:[%s4612_s3 + $0x74] ss:$8 sps:$4 sm:$0xff]   ;;  %v3807_v33 = vld [vmem:[%s4612_s3 + $0x70] ss:$8 sps:$4 sm:$0xff]   ;;  %v3809_v35 = vld [vmem:[%s4612_s3 + $0x64] ss:$8 sps:$4 sm:$0xff]  }
 0x1e6   : > { %v3805_v32 = vld [vmem:[%s4612_s3 + $0x174] ss:$8 sps:$4 sm:$0xff]   ;;  %2708 = vmatprep.subr.bf16.mxu0 %v3803_v31  ;;  %v3808_v34 = vld [vmem:[%s4612_s3 + $0x170] ss:$8 sps:$4 sm:$0xff]   ;;  %v3811_v36 = vld [vmem:[%s4612_s3 + $0x164] ss:$8 sps:$4 sm:$0xff]  }
 0x1e7   : > { %2749 = vmatprep.subr.bf16.mxu1 %v3805_v32  ;;  %2709 = vmatpush1.bf16.msra.mxu0 %v3807_v33  ;;  %v3813_v37 = vld [vmem:[%s4612_s3 + $0x60] ss:$8 sps:$4 sm:$0xff]   ;;  %v3815_v39 = vld [vmem:[%s4612_s3 + $0x54] ss:$8 sps:$4 sm:$0xff]   ;;  %v3819_v41 = vld [vmem:[%s4612_s3 + $0x50] ss:$8 sps:$4 sm:$0xff]  }
 0x1e8   : > { %2750 = vmatpush1.bf16.msra.mxu1 %v3808_v34  ;;  %2710 = vmatprep.subr.bf16.mxu0 %v3809_v35  ;;  %v3814_v38 = vld [vmem:[%s4612_s3 + $0x160] ss:$8 sps:$4 sm:$0xff]   ;;  %v3817_v40 = vld [vmem:[%s4612_s3 + $0x154] ss:$8 sps:$4 sm:$0xff]   ;;  %v3820_v42 = vld [vmem:[%s4612_s3 + $0x150] ss:$8 sps:$4 sm:$0xff]  }
 0x1e9   : > { %2751 = vmatprep.subr.bf16.mxu1 %v3811_v36  ;;  %v3821_v43 = vld [vmem:[%s4612_s3 + $0x44] ss:$8 sps:$4 sm:$0xff]   ;;  %v3825_v4 = vld [vmem:[%s4612_s3 + $0x40] ss:$8 sps:$4 sm:$0xff]   ;;  %v3827_v20 = vld [vmem:[%s4612_s3 + $0x34] ss:$8 sps:$4 sm:$0xff]  }
 0x1ea   : > { %v3823_v63 = vld [vmem:[%s4612_s3 + $0x144] ss:$8 sps:$4 sm:$0xff]   ;;  %v3826_v15 = vld [vmem:[%s4612_s3 + $0x140] ss:$8 sps:$4 sm:$0xff]   ;;  %v3829_v45 = vld [vmem:[%s4612_s3 + $0x134] ss:$8 sps:$4 sm:$0xff]  }
 0x1eb   : > { %2711 = vmatpush1.bf16.msra.mxu0 %v3813_v37  ;;  %v3831_v46 = vld [vmem:[%s4612_s3 + $0x30] ss:$8 sps:$4 sm:$0xff]   ;;  %v3833_v19 = vld [vmem:[%s4612_s3 + $0x24] ss:$8 sps:$4 sm:$0xff]   ;;  %v3837_v48 = vld [vmem:[%s4612_s3 + $0x20] ss:$8 sps:$4 sm:$0xff]  }
 0x1ec   : > { %2752 = vmatpush1.bf16.msra.mxu1 %v3814_v38  ;;  %2712 = vmatprep.subr.bf16.mxu0 %v3815_v39  ;;  %v3832_v47 = vld [vmem:[%s4612_s3 + $0x130] ss:$8 sps:$4 sm:$0xff]   ;;  %v3835_v25 = vld [vmem:[%s4612_s3 + $0x124] ss:$8 sps:$4 sm:$0xff]   ;;  %v3838_v49 = vld [vmem:[%s4612_s3 + $0x120] ss:$8 sps:$4 sm:$0xff]  }
 0x1ed   : > { %2753 = vmatprep.subr.bf16.mxu1 %v3817_v40  ;;  %v3839_v50 = vld [vmem:[%s4612_s3 + $0x14] ss:$8 sps:$4 sm:$0xff]   ;;  %v3843_v52 = vld [vmem:[%s4612_s3 + $0x10] ss:$8 sps:$4 sm:$0xff]   ;;  %v3845_v53 = vld [vmem:[%s4612_s3 + $0x4] ss:$8 sps:$4 sm:$0xff]  }
 0x1ee   : > { %v3841_v51 = vld [vmem:[%s4612_s3 + $0x114] ss:$8 sps:$4 sm:$0xff]   ;;  %v3844_v0 = vld [vmem:[%s4612_s3 + $0x110] ss:$8 sps:$4 sm:$0xff]   ;;  %v3847_v30 = vld [vmem:[%s4612_s3 + $0x104] ss:$8 sps:$4 sm:$0xff]  }
 0x1ef   : > { %2713 = vmatpush1.bf16.msra.mxu0 %v3819_v41  ;;  %v3849_v54 = vld [vmem:[%s4612_s3] ss:$8 sps:$4 sm:$0xff]   ;;  %v3851_v56 = vld [vmem:[%s4612_s3 + $0xf4] ss:$8 sps:$4 sm:$0xff]   ;;  %v3855_v58 = vld [vmem:[%s4612_s3 + $0xf0] ss:$8 sps:$4 sm:$0xff]  }
 0x1f0   : > { %2754 = vmatpush1.bf16.msra.mxu1 %v3820_v42  ;;  %2714 = vmatprep.subr.bf16.mxu0 %v3821_v43  ;;  %v3850_v55 = vld [vmem:[%s4612_s3 + $0x100] ss:$8 sps:$4 sm:$0xff]   ;;  %v3853_v57 = vld [vmem:[%s4612_s3 + $0x1f4] ss:$8 sps:$4 sm:$0xff]   ;;  %v3856_v59 = vld [vmem:[%s4612_s3 + $0x1f0] ss:$8 sps:$4 sm:$0xff]  }
 0x1f1   : > { %2755 = vmatprep.subr.bf16.mxu1 %v3823_v63  ;;  %v3857_v60 = vld [vmem:[%s4612_s3 + $0xe4] ss:$8 sps:$4 sm:$0xff]   ;;  %v3861_v62 = vld [vmem:[%s4612_s3 + $0xe0] ss:$8 sps:$4 sm:$0xff]   ;;  %v3863_v2 = vld [vmem:[%s4612_s3 + $0xd4] ss:$8 sps:$4 sm:$0xff]  }
 0x1f2   : > { %v3859_v61 = vld [vmem:[%s4612_s3 + $0x1e4] ss:$8 sps:$4 sm:$0xff]   ;;  %v3862_v1 = vld [vmem:[%s4612_s3 + $0x1e0] ss:$8 sps:$4 sm:$0xff]   ;;  %v3865_v3 = vld [vmem:[%s4612_s3 + $0x1d4] ss:$8 sps:$4 sm:$0xff]  }
 0x1f3   : > { %2715 = vmatpush1.bf16.msra.mxu0 %v3825_v4  ;;  %v3867_v5 = vld [vmem:[%s4612_s3 + $0xd0] ss:$8 sps:$4 sm:$0xff]   ;;  %v2252_v7 = vsub.s32 0, %v4058_v44  ;;  %v3869_v8 = vld [vmem:[%s4612_s3 + $0xc4] ss:$8 sps:$4 sm:$0xff]   ;;  %v2256_v9 = vsub.s32 1, %v4058_v44 }
 0x1f4   : > { %2756 = vmatpush1.bf16.msra.mxu1 %v3826_v15  ;;  %2716 = vmatprep.subr.bf16.mxu0 %v3827_v20  ;;  %v3868_v6 = vld [vmem:[%s4612_s3 + $0x1d0] ss:$8 sps:$4 sm:$0xff]   ;;  %v2260_v10 = vsub.s32 2, %v4058_v44  ;;  %v3871_v11 = vld [vmem:[%s4612_s3 + $0x1c4] ss:$8 sps:$4 sm:$0xff]   ;;  %v2264_v12 = vsub.s32 3, %v4058_v44 }
 0x1f5   : > { %2757 = vmatprep.subr.bf16.mxu1 %v3829_v45  ;;  %v3873_v13 = vld [vmem:[%s4612_s3 + $0xc0] ss:$8 sps:$4 sm:$0xff]   ;;  %v3875_v18 = vld [vmem:[%s4612_s3 + $0xb4] ss:$8 sps:$4 sm:$0xff]   ;;  %v3879_v27 = vld [vmem:[%s4612_s3 + $0xb0] ss:$8 sps:$4 sm:$0xff]  }
 0x1f6   : > { %v3874_v14 = vld [vmem:[%s4612_s3 + $0x1c0] ss:$8 sps:$4 sm:$0xff]   ;;  %v3877_v24 = vld [vmem:[%s4612_s3 + $0x1b4] ss:$8 sps:$4 sm:$0xff]   ;;  %v3880_v29 = vld [vmem:[%s4612_s3 + $0x1b0] ss:$8 sps:$4 sm:$0xff]  }
 0x1f7   : > { %2717 = vmatpush1.bf16.msra.mxu0 %v3831_v46  ;;  %v2248_v17 = vld [vmem:[%s4611_s2] sm:$0xf]  ;;  %v3881_v32 = vld [vmem:[%s4612_s3 + $0xa4] ss:$8 sps:$4 sm:$0xff]   ;;  %v3887_v40 = vld [vmem:[%s4612_s3 + $0x94] ss:$8 sps:$4 sm:$0xff]  }
 0x1f8   : > { %2758 = vmatpush1.bf16.msra.mxu1 %v3832_v47  ;;  %2718 = vmatprep.subr.bf16.mxu0 %v3833_v19  ;;  %v2253_v21 = vrot.slane %v2248_v17, %v2252_v7  ;;  %v2257_v22 = vrot.slane %v2248_v17, %v2256_v9  ;;  %v2261_v23 = vrot.slane %v2248_v17, %v2260_v10  ;;  %v3883_v34 = vld [vmem:[%s4612_s3 + $0x1a4] ss:$8 sps:$4 sm:$0xff]   ;;  %v3885_v37 = vld [vmem:[%s4612_s3 + $0xa0] ss:$8 sps:$4 sm:$0xff]   ;;  %v3889_v41 = vld [vmem:[%s4612_s3 + $0x194] ss:$8 sps:$4 sm:$0xff]  }
 0x1f9   : > { %2759 = vmatprep.subr.bf16.mxu1 %v3835_v25  ;;  %v2265_v26 = vrot.slane %v2248_v17, %v2264_v12  ;;  %v2247_v36 = vld [vmem:[#allocation2] sm:$0xff]  ;;  %v3891_v43 = vld [vmem:[%s4612_s3 + $0x90] ss:$8 sps:$4 sm:$0xff]   ;;  %vm2969_vm0 = vcmask 41984  }
 0x1fa   : > { %v2266_v28 = vcombine.low %v2253_v21, %v2257_v22  ;;  %v3886_v39 = vld [vmem:[%s4612_s3 + $0x1a0] ss:$8 sps:$4 sm:$0xff]   ;;  %v3892_v63 = vld [vmem:[%s4612_s3 + $0x190] ss:$8 sps:$4 sm:$0xff]   ;;  %v3893_v4 = vld [vmem:[%s4612_s3 + $0x84] ss:$8 sps:$4 sm:$0xff]  }
 0x1fb   : > { %2719 = vmatpush1.bf16.msra.mxu0 %v3837_v48  ;;  %v2267_v31 = vcombine.low %v2261_v23, %v2265_v26  ;;  %v3895_v15 = vld [vmem:[%s4612_s3 + $0x184] ss:$8 sps:$4 sm:$0xff]   ;;  %v3897_v25 = vld [vmem:[%s4612_s3 + $0x80] ss:$8 sps:$4 sm:$0xff]  }
 0x1fc   : > { %2760 = vmatpush1.bf16.msra.mxu1 %v3838_v49  ;;  %2720 = vmatprep.subr.bf16.mxu0 %v3839_v50  ;;  %v2274_v33 = vrot.slane %v2266_v28, %v4324_v16  ;;  %v3898_v48 = vld [vmem:[%s4612_s3 + $0x180] ss:$8 sps:$4 sm:$0xff]  }
 0x1fd   : > { %2761 = vmatprep.subr.bf16.mxu1 %v3841_v51  ;;  %v2281_v35 = vrot.slane %v2267_v31, %v4324_v16  ;;  %v3899_v51 = vld [vmem:[%s4614_s5 + $0x78] sm:$0xff]  }
 0x1ff   : > { %2721 = vmatpush1.bf16.msra.mxu0 %v3843_v52  ;;  %v2282_v38 = vcombine.low %v2274_v33, %v2281_v35 }
 0x200   : > { %2762 = vmatpush1.bf16.msra.mxu1 %v3844_v0  ;;  %2722 = vmatprep.subr.bf16.mxu0 %v3845_v53  ;;  %v3900_v53 = vld [vmem:[%s4614_s5 + $0x38] sm:$0xff]  }
 0x201   : > { %2763 = vmatprep.subr.bf16.mxu1 %v3847_v30  ;;  %v2284_v42 = vadd.f32 %v2282_v38, %v2247_v36  ;;  %v3901_v30 = vld [vmem:[%s4614_s5 + $0x70] sm:$0xff]  }
 0x203   : > { %2723 = vmatpush1.bf16.msra.mxu0 %v3849_v54  ;;  %v2285_v20 = vmax.f32 %v2284_v42, 0.0  ;;  %v3902_v54 = vld [vmem:[%s4614_s5 + $0x30] sm:$0xff]  }
 0x204   : > { %2764 = vmatpush1.bf16.msra.mxu1 %v3850_v55  ;;  %2724 = vmatprep.subr.bf16.mxu0 %v3851_v56  ;;  %v3903_v55 = vld [vmem:[%s4614_s5 + $0x68] sm:$0xff]  }
 0x205   : > { %2765 = vmatprep.subr.bf16.mxu1 %v3853_v57  ;;  %v2294_v45 = vrot.slane %v2285_v20, %v4324_v16  ;;  %v2287_v46 = vcombine.high %v2285_v20, %v2285_v20  ;;  %v3904_v56 = vld [vmem:[%s4614_s5 + $0x28] sm:$0xff]   ;;  %v3905_v57 = vld [vmem:[%s4614_s5 + $0x60] sm:$0xff]  }
 0x207   : > { %2725 = vmatpush2.bf16.msra.mxu0 %v3855_v58  ;;  %v2302_v47 = vcombine.high %v2294_v45, %v2294_v45  ;;  %v2301_v19 = vrot.slane %v2287_v46, %v4324_v16  ;;  %v2308_v52 = vpack.c.bf16 %v2294_v45, %v2294_v45  ;;  %v3906_v58 = vld [vmem:[%s4614_s5 + $0x20] sm:$0xff]  }
 0x208   : > { %2766 = vmatpush2.bf16.msra.mxu1 %v3856_v59  ;;  %2726 = vmatprep.subr.bf16.mxu0 %v3857_v60  ;;  %v3907_v59 = vld [vmem:[%s4614_s5 + $0x58] sm:$0xff]  }
 0x209   : > { %2767 = vmatprep.subr.bf16.mxu1 %v3859_v61  ;;  %v2309_v49 = vpack.c.bf16 %v2302_v47, %v2302_v47  ;;  %v2303_v50 = vcombine.high %v2301_v19, %v2301_v19  ;;  %v2310_v0 = vpack.c.bf16 %v2301_v19, %v2301_v19  ;;  %v3908_v60 = vld [vmem:[%s4614_s5 + $0x18] sm:$0xff]   ;;  %v3909_v61 = vld [vmem:[%s4614_s5 + $0x50] sm:$0xff]  }
 0x20b   : > { %2727 = vmatpush2.bf16.msra.mxu0 %v3861_v62  ;;  %2740 = vmatprep.mubr.bf16.mxu0 %v2309_v49  ;;  %v2311_v16 = vpack.c.bf16 %v2303_v50, %v2303_v50  ;;  %v3910_v62 = vld [vmem:[%s4614_s5 + $0x10] sm:$0xff]  }
 0x20c   : > { %2768 = vmatpush2.bf16.msra.mxu1 %v3862_v1  ;;  %2728 = vmatprep.subr.bf16.mxu0 %v3863_v2  ;;  %v3911_v1 = vld [vmem:[%s4614_s5 + $0x48] sm:$0xff]  }
 0x20d   : > { %2769 = vmatprep.subr.bf16.mxu1 %v3865_v3  ;;  %2781 = vmatprep.mubr.bf16.mxu1 %v2311_v16  ;;  %v3912_v2 = vld [vmem:[%s4614_s5 + $0x8] sm:$0xff]   ;;  %v3913_v3 = vld [vmem:[%s4614_s5 + $0x40] sm:$0xff]  }
 0x20f   : > { %2729 = vmatpush2.bf16.msra.mxu0 %v3867_v5  ;;  %v3914_v5 = vld [vmem:[%s4614_s5] sm:$0xff]  }
 0x210   : > { %2770 = vmatpush2.bf16.msra.mxu1 %v3868_v6  ;;  %2730 = vmatprep.subr.bf16.mxu0 %v3869_v8  ;;  %v2376_v6 = vld [vmem:[%s4613_s4] sm:$0x3] }
 0x211   : > { %2771 = vmatprep.subr.bf16.mxu1 %v3871_v11  ;;  %v2381_v8 = vrot.slane %v2376_v6, %v2252_v7  ;;  %v2385_v10 = vrot.slane %v2376_v6, %v2256_v9  ;;  %v3356_v7 = vld [vmem:[%s4615_s6] ss:$0 sm:$0xff] }
 0x213   : > { %2731 = vmatpush2.bf16.msra.mxu0 %v3873_v13 }
 0x214   : > { %2772 = vmatpush2.bf16.msra.mxu1 %v3874_v14  ;;  %2732 = vmatprep.subr.bf16.mxu0 %v3875_v18 }
 0x215   : > { %2773 = vmatprep.subr.bf16.mxu1 %v3877_v24 }
 0x217   : > { %2733 = vmatpush2.bf16.msra.mxu0 %v3879_v27 }
 0x218   : > { %2774 = vmatpush2.bf16.msra.mxu1 %v3880_v29  ;;  %2734 = vmatprep.subr.bf16.mxu0 %v3881_v32 }
 0x219   : > { %2775 = vmatprep.subr.bf16.mxu1 %v3883_v34 }
 0x21b   : > { %2735 = vmatpush2.bf16.msra.mxu0 %v3885_v37 }
 0x21c   : > { %2776 = vmatpush2.bf16.msra.mxu1 %v3886_v39  ;;  %2736 = vmatprep.subr.bf16.mxu0 %v3887_v40 }
 0x21d   : > { %2777 = vmatprep.subr.bf16.mxu1 %v3889_v41 }
 0x21f   : > { %2737 = vmatpush2.bf16.msra.mxu0 %v3891_v43 }
 0x220   : > { %2778 = vmatpush2.bf16.msra.mxu1 %v3892_v63  ;;  %2738 = vmatprep.subr.bf16.mxu0 %v3893_v4 }
 0x221   : > { %2779 = vmatprep.subr.bf16.mxu1 %v3895_v15 }
 0x223   : > { %2739 = vmatpush2.bf16.msra.mxu0 %v3897_v25 }
 0x224   : > { %2780 = vmatpush2.bf16.msra.mxu1 %v3898_v48  ;;  %3378 = vmatprep.subr.bf16.mxu0 %v3899_v51 }
 0x226   : > { %2741 = vmatmul.mubr.bf16.vlgmr.msra.gmra.mxu0 %v2308_v52 }
 0x227   : > { %2782 = vmatmul.mubr.bf16.vlgmr.msra.gmra.mxu1 %v2310_v0  ;;  %3379 = vmatpush3.bf16.msra.mxu0 %v3900_v53 }
 0x228   : > { %3380 = vmatprep.subr.bf16.mxu0 %v3901_v30 }
 0x22b   : > { %3381 = vmatpush3.bf16.msra.mxu0 %v3902_v54 }
 0x22c   : > { %3382 = vmatprep.subr.bf16.mxu0 %v3903_v55 }
 0x22f   : > { %3383 = vmatpush3.bf16.msra.mxu0 %v3904_v56 }
 0x230   : > { %3384 = vmatprep.subr.bf16.mxu0 %v3905_v57 }
 0x233   : > { %3385 = vmatpush3.bf16.msra.mxu0 %v3906_v58 }
 0x234   : > { %3386 = vmatprep.subr.bf16.mxu0 %v3907_v59 }
 0x237   : > { %3387 = vmatpush3.bf16.msra.mxu0 %v3908_v60 }
 0x238   : > { %3388 = vmatprep.subr.bf16.mxu0 %v3909_v61 }
 0x23b   : > { %3389 = vmatpush3.bf16.msra.mxu0 %v3910_v62 }
 0x23c   : > { %3390 = vmatprep.subr.bf16.mxu0 %v3911_v1 }
 0x23f   : > { %3391 = vmatpush3.bf16.msra.mxu0 %v3912_v2 }
 0x240   : > { %3392 = vmatprep.subr.bf16.mxu0 %v3913_v3 }
 0x243   : > { %3393 = vmatpush3.bf16.msra.mxu0 %v3914_v5 }
 0x2e6   : > { %v2742_v11 = vpop.f32.mrf.mxu0 }
 0x2e7   : > { %v2783_v12 = vpop.f32.mrf.mxu1  ;;  %v2743_v13 = vadd.f32 %v2742_v11, %v2381_v8 }
 0x2e8   : > { %v2744_v14 = vpop.f32.mrf.mxu0 }
 0x2e9   : > { %v2785_v17 = vpop.f32.mrf.mxu1  ;;  %v2784_v18 = vadd.f32 %v2783_v12, %v2743_v13  ;;  %v2745_v21 = vadd.f32 %v2744_v14, %v2385_v10 }
 0x2ea   : > { %v2746_v22 = vpop.f32.mrf.mxu0 }
 0x2eb   : > { %v2787_v23 = vpop.f32.mrf.mxu1  ;;  %v2786_v24 = vadd.f32 %v2785_v17, %v2745_v21  ;;  %v2790_v26 = vmax.f32 %v2784_v18, 0.0 }
 0x2ec   : > { %v2747_v27 = vpop.f32.mrf.mxu0 }
 0x2ed   : > { %v2788_v28 = vpop.f32.mrf.mxu1  ;;  %v2791_v29 = vmax.f32 %v2786_v24, 0.0  ;;  %v2792_v32 = vpack.c.bf16 %v2790_v26, %v2790_v26 }
 0x2ef   : > { %v2793_v31 = vpack.c.bf16 %v2791_v29, %v2791_v29 }
 0x2f1   : > { %2961 = vmatprep.mubr.bf16.mxu0 %v2793_v31 }
 0x2f2   : > { %2962 = vmatmul.mubr.bf16.vlgmr.msra.gmra.mxu0 %v2792_v32 }
 0x3b2   : > { %v3394_v44 = vpop.f32.mrf.mxu0 }
 0x3b4   : > { %v3395_v9 = vpop.f32.mrf.mxu0 }
 0x3b5   : > { %v3396_v33 = vadd.f32 %v3395_v9, %v3394_v44 }
 0x3b6   : > { %v3397_v34 = vpop.f32.mrf.mxu0 }
 0x3b7   : > { %v2964_v35 = vadd.f32 %v3396_v33, %v3356_v7 }
 0x3b8   : > { %v3398_v36 = vpop.f32.mrf.mxu0 }
 0x3b9   : > { %2970 = vst.msk [vmem:[#allocation3] sm:$0x3] %vm2969_vm0, %v2964_v35 }
 0x3ba PF: > { %p3404_p7 = scmp.eq.s32.totalorder %s4001_s25, 3  ;;  %s3954_s12 = smov [#allocation3]  }
 0x3bb   : > { %s2978_s13 = sshll.u32 %s3954_s12, 4  ;;  %s2979_s13 = int_to_ptr.vmem [resolvable:$true] %s2978_s13 }
 0x3bc   : > { %s3915_s14 = scalar_lea.vmem %s2979_s13, 32  ;;  %p3922_p11 = scmp.lt.s32.totalorder %s2979_s13, %s2979_s13 }
 0x3bd   : > { %p3916_p8 = scmp.ne.s32.totalorder %s2979_s13, %s3915_s14  ;;  %p3923_p12 = scmp.lt.s32.totalorder %s3915_s14, %s3915_s14 }
 0x3bf   : > { %p3917_p9 = pnand %p3916_p8, %p3404_p7  ;;  %p3924_p13 = por %p3923_p12, %p3922_p11 }
 0x3c1   : > { %p3918_p10 = pneg %p3917_p9 }
 0x3c3   : > { %p3925_p0 = pnand %p3924_p13, %p3918_p10 }
 0x3c5   : > { %3928 = shalt.err (!%p3925_p0)
}
 0x3c6   : > { %3401 = dma.vmem_to_hbm [thread:$0]  (%p3404_p7), %s2979_s13, 32, %s4616_s7, [#allocation4]  }
 0x3c7   : > { %3944 = dma.done.wait (%p3404_p7), [#allocation4], 32  }
 0x3c8   : > { %3946 = vsyncadd (%p3404_p7), [#allocation4], 4294967264 }
 0x3c9 PF: > { %s18_s24 = sadd.s32 1, %s3949_s24  }
 0x3ca   : > { %p15_p1 = scmp.ge.s32.totalorder %s18_s24, 6  }
 0x3cc   :  { %17 = sbr.rel (!%p15_p1) target bundleno = 1 (0x1), region = 86 }
 0x3d1   :  { %2991 = vsyncpa [#allocation4], 1 }
 0x3d2   :  { %2993 = vsyncpa [#allocation4 + $0x1], 1 }

</bundles_post_ra>
